<compile_context>
chip_gen: v7x
topology: tpu7x:2x2x1
jax: 0.10.0
libtpu: 0.0.40
codegen_flags: <defaults>
</compile_context>

<pallas_src>
import jax
import jax.numpy as jnp
from jax.experimental import pallas as pl
from jax.experimental.pallas import tpu as pltpu

NEG_SLOPE = 0.2            # LeakyReLU(0.2)
IN_EPS = 1e-5              # nn.InstanceNorm2d default eps
LANE = 128
VMEM_LIMIT = 48 * 1024 * 1024


def _round_up(x, m):
    return (x + m - 1) // m * m


def _pad_last(a, target):
    pad = target - a.shape[-1]
    if pad == 0:
        return a
    return jnp.pad(a, [(0, 0)] * (a.ndim - 1) + [(0, pad)])


def _im2col(x_nhwc, stride):
    """Reflect-pad(1) + k=4 patch extraction -> (N, OH*OW, 16*Cin), OH, OW."""
    xp = jnp.pad(x_nhwc, ((0, 0), (1, 1), (1, 1), (0, 0)), mode="reflect")
    N, Hp, Wp, Cin = xp.shape
    OH = (Hp - 4) // stride + 1
    OW = (Wp - 4) // stride + 1
    taps = []
    for i in range(4):
        for j in range(4):
            taps.append(xp[:, i:i + stride * (OH - 1) + 1:stride,
                           j:j + stride * (OW - 1) + 1:stride, :])
    p = jnp.stack(taps, axis=3).reshape(N, OH * OW, 16 * Cin)
    return p, OH, OW


def _weight_matrix(w_oihw, k_pad, c_pad):
    """(Cout, Cin, 4, 4) -> (k_pad, c_pad) bf16, rows ordered (kh, kw, cin)."""
    Cout, Cin, KH, KW = w_oihw.shape
    w = jnp.transpose(w_oihw, (2, 3, 1, 0)).reshape(KH * KW * Cin, Cout)
    w = jnp.pad(w, ((0, k_pad - KH * KW * Cin), (0, c_pad - Cout)))
    return w.astype(jnp.bfloat16)


# --------------------------------------------------------------------------
# Kernels
# --------------------------------------------------------------------------
def _make_bias_act_kernel(use_lrelu):
    """patches @ W + bias [+ LeakyReLU].  M-tiled, batch folded into M."""
    def kernel(p_ref, w_ref, b_ref, o_ref):
        acc = jnp.dot(p_ref[...], w_ref[...], preferred_element_type=jnp.float32)
        acc = acc + b_ref[...]
        if use_lrelu:
            acc = jnp.where(acc > 0, acc, NEG_SLOPE * acc)
        o_ref[...] = acc.astype(o_ref.dtype)
    return kernel


def _mm_stats_kernel(p_ref, w_ref, y_ref, sum_ref, sq_ref, acc_s, acc_q):
    """Pass 1: conv tile + per-(sample, channel) sum / sumsq across R tiles."""
    r = pl.program_id(1)

    @pl.when(r == 0)
    def _():
        acc_s[...] = jnp.zeros_like(acc_s)
        acc_q[...] = jnp.zeros_like(acc_q)

    acc = jnp.dot(p_ref[...], w_ref[...], preferred_element_type=jnp.float32)
    y_ref[...] = acc
    acc_s[...] += jnp.sum(acc, axis=0, keepdims=True)
    acc_q[...] += jnp.sum(acc * acc, axis=0, keepdims=True)

    @pl.when(r == pl.num_programs(1) - 1)
    def _():
        sum_ref[...] = acc_s[...]
        sq_ref[...] = acc_q[...]


def _make_norm_act_kernel(inv_r):
    """Pass 2: InstanceNorm (from sum/sumsq) + affine + LeakyReLU."""
    def kernel(y_ref, sum_ref, sq_ref, g_ref, b_ref, o_ref):
        mean = sum_ref[...] * inv_r
        var = jnp.maximum(sq_ref[...] * inv_r - mean * mean, 0.0)
        scale = g_ref[...] * jax.lax.rsqrt(var + IN_EPS)
        shift = b_ref[...] - mean * scale
        v = y_ref[...] * scale + shift
        o_ref[...] = jnp.where(v > 0, v, NEG_SLOPE * v).astype(o_ref.dtype)
    return kernel


# --------------------------------------------------------------------------
# Layer wrappers
# --------------------------------------------------------------------------
def conv_bias_act(x_nhwc, w_oihw, bias, *, stride, use_lrelu):
    """Conv2d(k=4, pad=1 reflect, bias=True) [+ LeakyReLU(0.2)]."""
    p, OH, OW = _im2col(x_nhwc, stride)
    N, R, K = p.shape
    Cout = w_oihw.shape[0]
    Kp = _round_up(K, LANE)
    Cp = _round_up(Cout, LANE)
    M = N * R
    TM = min(256, _round_up(M, 8))
    Mp = _round_up(M, TM)

    pm = _pad_last(p.reshape(M, K), Kp)
    if Mp > M:
        pm = jnp.pad(pm, ((0, Mp - M), (0, 0)))
    pm = pm.astype(jnp.bfloat16)
    w_mat = _weight_matrix(w_oihw, Kp, Cp)
    b = _pad_last(bias.reshape(1, Cout).astype(jnp.float32), Cp)

    out = pl.pallas_call(
        _make_bias_act_kernel(use_lrelu),
        out_shape=jax.ShapeDtypeStruct((Mp, Cp), jnp.float32),
        grid=(Mp // TM,),
        in_specs=[
            pl.BlockSpec((TM, Kp), lambda i: (i, 0)),
            pl.BlockSpec((Kp, Cp), lambda i: (0, 0)),   # weights stay resident
            pl.BlockSpec((1, Cp), lambda i: (0, 0)),
        ],
        out_specs=pl.BlockSpec((TM, Cp), lambda i: (i, 0)),
        compiler_params=pltpu.CompilerParams(
            dimension_semantics=("parallel",),
            vmem_limit_bytes=VMEM_LIMIT),
    )(pm, w_mat, b)
    return out[:M, :Cout].reshape(N, OH, OW, Cout)


def dblock(x_nhwc, w_oihw, gamma, beta, *, stride):
    """Conv2d(k=4, pad=1 reflect, bias=False) + InstanceNorm2d(affine) + LeakyReLU(0.2)."""
    p, OH, OW = _im2col(x_nhwc, stride)
    N, R, K = p.shape
    Cout = w_oihw.shape[0]
    Kp = _round_up(K, LANE)
    Cp = _round_up(Cout, LANE)
    TR = min(256, _round_up(R, 8))
    Rp = _round_up(R, TR)
    nR = Rp // TR

    p = _pad_last(p, Kp)
    if Rp > R:
        # Zero-padded rows contribute exactly 0 to sum/sumsq (conv has no bias).
        p = jnp.pad(p, ((0, 0), (0, Rp - R), (0, 0)))
    p = p.astype(jnp.bfloat16)
    w_mat = _weight_matrix(w_oihw, Kp, Cp)

    # Pass 1: matmul tiles + per-sample statistics over the R ("arbitrary") axis.
    y, s1, s2 = pl.pallas_call(
        _mm_stats_kernel,
        out_shape=(jax.ShapeDtypeStruct((N, Rp, Cp), jnp.float32),
                   jax.ShapeDtypeStruct((N, 1, Cp), jnp.float32),
                   jax.ShapeDtypeStruct((N, 1, Cp), jnp.float32)),
        grid=(N, nR),
        in_specs=[
            pl.BlockSpec((None, TR, Kp), lambda n, r: (n, r, 0)),
            pl.BlockSpec((Kp, Cp), lambda n, r: (0, 0)),   # weights stay resident
        ],
        out_specs=(
            pl.BlockSpec((None, TR, Cp), lambda n, r: (n, r, 0)),
            pl.BlockSpec((None, 1, Cp), lambda n, r: (n, 0, 0)),
            pl.BlockSpec((None, 1, Cp), lambda n, r: (n, 0, 0)),
        ),
        scratch_shapes=[pltpu.VMEM((1, Cp), jnp.float32),
                        pltpu.VMEM((1, Cp), jnp.float32)],
        compiler_params=pltpu.CompilerParams(
            dimension_semantics=("parallel", "arbitrary"),
            vmem_limit_bytes=VMEM_LIMIT),
    )(p, w_mat)

    g = _pad_last(gamma.reshape(1, Cout).astype(jnp.float32), Cp)
    b = _pad_last(beta.reshape(1, Cout).astype(jnp.float32), Cp)

    # Pass 2: normalize + affine + LeakyReLU (fully parallel grid).
    out = pl.pallas_call(
        _make_norm_act_kernel(1.0 / R),   # divide by the *real* spatial count
        out_shape=jax.ShapeDtypeStruct((N, Rp, Cp), jnp.float32),
        grid=(N, nR),
        in_specs=[
            pl.BlockSpec((None, TR, Cp), lambda n, r: (n, r, 0)),
            pl.BlockSpec((None, 1, Cp), lambda n, r: (n, 0, 0)),
            pl.BlockSpec((None, 1, Cp), lambda n, r: (n, 0, 0)),
            pl.BlockSpec((1, Cp), lambda n, r: (0, 0)),
            pl.BlockSpec((1, Cp), lambda n, r: (0, 0)),
        ],
        out_specs=pl.BlockSpec((None, TR, Cp), lambda n, r: (n, r, 0)),
        compiler_params=pltpu.CompilerParams(
            dimension_semantics=("parallel", "parallel"),
            vmem_limit_bytes=VMEM_LIMIT),
    )(y, s1, s2, g, b)
    return out[:, :R, :Cout].reshape(N, OH, OW, Cout)


# --------------------------------------------------------------------------
# Model
# --------------------------------------------------------------------------
def init_params(key, in_channels, features):
    """Deterministic synthetic parameters (PyTorch weight shapes)."""
    f0, f1, f2, f3 = features
    ks = jax.random.split(key, 8)
    std = 0.05
    p = {}
    p["w0"] = std * jax.random.normal(ks[0], (f0, in_channels * 2, 4, 4), jnp.float32)
    p["b0"] = std * jax.random.normal(ks[1], (f0,), jnp.float32)
    p["w1"] = std * jax.random.normal(ks[2], (f1, f0, 4, 4), jnp.float32)
    p["g1"] = jnp.ones((f1,), jnp.float32)
    p["be1"] = jnp.zeros((f1,), jnp.float32)
    p["w2"] = std * jax.random.normal(ks[3], (f2, f1, 4, 4), jnp.float32)
    p["g2"] = jnp.ones((f2,), jnp.float32)
    p["be2"] = jnp.zeros((f2,), jnp.float32)
    p["w3"] = std * jax.random.normal(ks[4], (f3, f2, 4, 4), jnp.float32)
    p["g3"] = jnp.ones((f3,), jnp.float32)
    p["be3"] = jnp.zeros((f3,), jnp.float32)
    p["w4"] = std * jax.random.normal(ks[5], (1, f3, 4, 4), jnp.float32)
    p["b4"] = std * jax.random.normal(ks[6], (1,), jnp.float32)
    return p


def discriminator_forward(params, x_nchw, y_nchw):
    """Matches Discriminator.forward(x, y); inputs/outputs are NCHW."""
    x = jnp.concatenate([x_nchw, y_nchw], axis=1)
    h = jnp.transpose(x, (0, 2, 3, 1))                       # -> NHWC
    h = conv_bias_act(h, params["w0"], params["b0"], stride=2, use_lrelu=True)
    h = dblock(h, params["w1"], params["g1"], params["be1"], stride=2)
    h = dblock(h, params["w2"], params["g2"], params["be2"], stride=2)
    h = dblock(h, params["w3"], params["g3"], params["be3"], stride=1)
    h = conv_bias_act(h, params["w4"], params["b4"], stride=1, use_lrelu=False)
    return jnp.transpose(h, (0, 3, 1, 2))                    # -> NCHW


# --------------------------------------------------------------------------
# Pure-JAX f32 reference (for a loose correctness check)
# --------------------------------------------------------------------------
def _ref_forward(params, x_nchw, y_nchw):
    def conv(h, w, b=None, stride=1):
        hp = jnp.pad(h, ((0, 0), (1, 1), (1, 1), (0, 0)), mode="reflect")
        out = jax.lax.conv_general_dilated(
            hp, jnp.transpose(w, (2, 3, 1, 0)),
            window_strides=(stride, stride), padding="VALID",
            dimension_numbers=("NHWC", "HWIO", "NHWC"),
            precision=jax.lax.Precision.HIGHEST)
        return out if b is None else out + b

    def inorm(h, g, be):
        m = jnp.mean(h, axis=(1, 2), keepdims=True)
        v = jnp.mean((h - m) ** 2, axis=(1, 2), keepdims=True)
        return (h - m) * jax.lax.rsqrt(v + IN_EPS) * g + be

    def lrelu(h):
        return jnp.where(h > 0, h, NEG_SLOPE * h)

    h = jnp.transpose(jnp.concatenate([x_nchw, y_nchw], axis=1), (0, 2, 3, 1))
    h = lrelu(conv(h, params["w0"], params["b0"], 2))
    h = lrelu(inorm(conv(h, params["w1"], None, 2), params["g1"], params["be1"]))
    h = lrelu(inorm(conv(h, params["w2"], None, 2), params["g2"], params["be2"]))
    h = lrelu(inorm(conv(h, params["w3"], None, 1), params["g3"], params["be3"]))
    h = conv(h, params["w4"], params["b4"], 1)
    return jnp.transpose(h, (0, 3, 1, 2))


if __name__ == "__main__":
    key = jax.random.PRNGKey(0)
    kx, ky, kp = jax.random.split(key, 3)

    # Small shapes consistent with the module: 32 is the minimum spatial size
    # for which the 5-conv stack is valid.
    N, C, H, W = 2, 4, 32, 32
    features = (8, 16, 32, 64)

    x = jax.random.normal(kx, (N, C, H, W), jnp.float32)
    y = jax.random.normal(ky, (N, C, H, W), jnp.float32)
    params = init_params(kp, in_channels=C, features=features)

    fwd = jax.jit(discriminator_forward)
    out = jax.block_until_ready(fwd(params, x, y))
    assert out.shape == (N, 1, 2, 2), out.shape

    # Loose sanity check against a pure-f32 XLA reference (kernel uses bf16 MXU inputs).
    ref = jax.block_until_ready(_ref_forward(params, x, y))
    err = float(jnp.max(jnp.abs(out - ref)))
    tol = 0.1 * (1.0 + float(jnp.max(jnp.abs(ref))))
    assert err < tol, f"mismatch vs reference: max abs err {err} (tol {tol})"

    print("KERNEL_OK")
</pallas_src>

<mosaic_0001>
module attributes {stable_mosaic.version = 11 : i64} {
  func.func @kernel(%arg0: i32, %arg1: memref<256x128xbf16, #tpu.memory_space<vmem>>, %arg2: memref<128x128xbf16, #tpu.memory_space<vmem>>, %arg3: memref<1x128xf32, #tpu.memory_space<vmem>>, %arg4: memref<256x128xf32, #tpu.memory_space<vmem>>) attributes {dimension_semantics = [#tpu.dimension_semantics<parallel>], iteration_bounds = array<i64: 2>, scalar_prefetch = 0 : i64, scratch_operands = 0 : i64, tpu.core_type = #tpu.core_type<tc>, window_params = [{transform_indices = @transform_0, window_bounds = array<i64: 256, 128>}, {pipeline_mode = #tpu.pipeline_mode<synchronous>, transform_indices = @transform_1, window_bounds = array<i64: 128, 128>}, {pipeline_mode = #tpu.pipeline_mode<synchronous>, transform_indices = @transform_2, window_bounds = array<i64: 1, 128>}, {transform_indices = @transform_3, window_bounds = array<i64: 256, 128>}]} {
    %c0 = arith.constant 0 : index
    %c0_0 = arith.constant 0 : index
    %0 = vector.load %arg1[%c0, %c0_0] : memref<256x128xbf16, #tpu.memory_space<vmem>>, vector<256x128xbf16>
    %c0_1 = arith.constant 0 : index
    %c0_2 = arith.constant 0 : index
    %1 = vector.load %arg2[%c0_1, %c0_2] : memref<128x128xbf16, #tpu.memory_space<vmem>>, vector<128x128xbf16>
    %cst = arith.constant dense<0.000000e+00> : vector<256x128xf32>
    %2 = tpu.matmul %0, %1, %cst {dimension_numbers = #tpu.dot_dimension_numbers<[1], [0], [0], [1], [0, 0, 1, 1], [], []>} : vector<256x128xbf16>, vector<128x128xbf16>, vector<256x128xf32> -> vector<256x128xf32>
    %c0_3 = arith.constant 0 : index
    %c0_4 = arith.constant 0 : index
    %3 = vector.load %arg3[%c0_3, %c0_4] : memref<1x128xf32, #tpu.memory_space<vmem>>, vector<1x128xf32>
    %4 = vector.broadcast %3 : vector<1x128xf32> to vector<256x128xf32>
    %5 = arith.addf %2, %4 : vector<256x128xf32>
    %cst_5 = arith.constant 0.000000e+00 : f32
    %6 = vector.broadcast %cst_5 : f32 to vector<256x128xf32>
    %7 = arith.cmpf ogt, %5, %6 : vector<256x128xf32>
    %cst_6 = arith.constant 2.000000e-01 : f32
    %8 = vector.broadcast %cst_6 : f32 to vector<256x128xf32>
    %9 = arith.mulf %8, %5 : vector<256x128xf32>
    %10 = arith.select %7, %5, %9 : vector<256x128xi1>, vector<256x128xf32>
    %c0_7 = arith.constant 0 : index
    %c0_8 = arith.constant 0 : index
    %11 = vector.load %arg4[%c0_7, %c0_8] : memref<256x128xf32, #tpu.memory_space<vmem>>, vector<256x128xf32>
    tpu.vector_store %arg4[%c0_7, %c0_8], %10 {strides = array<i32>} : memref<256x128xf32, #tpu.memory_space<vmem>>, vector<256x128xf32>,
    return
  }
  func.func @transform_0(%arg0: i32) -> (i32, i32) {
    %c0_i32 = arith.constant 0 : i32
    %c0_i32_0 = arith.constant 0 : i32
    return %arg0, %c0_i32 : i32, i32
  }
  func.func @transform_1(%arg0: i32) -> (i32, i32) {
    %c0_i32 = arith.constant 0 : i32
    %c0_i32_0 = arith.constant 0 : i32
    %c0_i32_1 = arith.constant 0 : i32
    return %c0_i32, %c0_i32_0 : i32, i32
  }
  func.func @transform_2(%arg0: i32) -> (i32, i32) {
    %c0_i32 = arith.constant 0 : i32
    %c0_i32_0 = arith.constant 0 : i32
    %c0_i32_1 = arith.constant 0 : i32
    return %c0_i32, %c0_i32_0 : i32, i32
  }
  func.func @transform_3(%arg0: i32) -> (i32, i32) {
    %c0_i32 = arith.constant 0 : i32
    %c0_i32_0 = arith.constant 0 : i32
    return %arg0, %c0_i32 : i32, i32
  }
}

module attributes {stable_mosaic.version = 11 : i64} {
  func.func @_mm_stats_kernel(%arg0: i32, %arg1: i32, %arg2: memref<1x64x128xbf16, #tpu.memory_space<vmem>>, %arg3: memref<128x128xbf16, #tpu.memory_space<vmem>>, %arg4: memref<1x64x128xf32, #tpu.memory_space<vmem>>, %arg5: memref<1x1x128xf32, #tpu.memory_space<vmem>>, %arg6: memref<1x1x128xf32, #tpu.memory_space<vmem>>, %arg7: memref<1x128xf32, #tpu.memory_space<vmem>>, %arg8: memref<1x128xf32, #tpu.memory_space<vmem>>) attributes {dimension_semantics = [#tpu.dimension_semantics<parallel>, #tpu.dimension_semantics<arbitrary>], iteration_bounds = array<i64: 2, 1>, scalar_prefetch = 0 : i64, scratch_operands = 2 : i64, tpu.core_type = #tpu.core_type<tc>, window_params = [{transform_indices = @transform_0, window_bounds = array<i64: 1, 64, 128>}, {pipeline_mode = #tpu.pipeline_mode<synchronous>, transform_indices = @transform_1, window_bounds = array<i64: 128, 128>}, {transform_indices = @transform_2, window_bounds = array<i64: 1, 64, 128>}, {transform_indices = @transform_3, window_bounds = array<i64: 1, 1, 128>}, {transform_indices = @transform_4, window_bounds = array<i64: 1, 1, 128>}]} {
    %c0_i32 = arith.constant 0 : i32
    %0 = arith.cmpi eq, %arg1, %c0_i32 : i32
    %1 = arith.extui %0 : i1 to i32
    %c0_i32_0 = arith.constant 0 : i32
    %2 = arith.cmpi ne, %1, %c0_i32_0 : i32
    scf.if %2 {
      %cst_20 = arith.constant 0.000000e+00 : f32
      %24 = vector.broadcast %cst_20 : f32 to vector<1x128xf32>
      %c0_21 = arith.constant 0 : index
      %c0_22 = arith.constant 0 : index
      %25 = vector.load %arg7[%c0_21, %c0_22] : memref<1x128xf32, #tpu.memory_space<vmem>>, vector<1x128xf32>
      tpu.vector_store %arg7[%c0_21, %c0_22], %24 {strides = array<i32>} : memref<1x128xf32, #tpu.memory_space<vmem>>, vector<1x128xf32>,
      %cst_23 = arith.constant 0.000000e+00 : f32
      %26 = vector.broadcast %cst_23 : f32 to vector<1x128xf32>
      %c0_24 = arith.constant 0 : index
      %c0_25 = arith.constant 0 : index
      %27 = vector.load %arg8[%c0_24, %c0_25] : memref<1x128xf32, #tpu.memory_space<vmem>>, vector<1x128xf32>
      tpu.vector_store %arg8[%c0_24, %c0_25], %26 {strides = array<i32>} : memref<1x128xf32, #tpu.memory_space<vmem>>, vector<1x128xf32>,
    } else {
    }
    %c0 = arith.constant 0 : index
    %c0_1 = arith.constant 0 : index
    %c0_2 = arith.constant 0 : index
    %3 = vector.load %arg2[%c0, %c0_1, %c0_2] : memref<1x64x128xbf16, #tpu.memory_space<vmem>>, vector<1x64x128xbf16>
    %4 = vector.shape_cast %3 : vector<1x64x128xbf16> to vector<64x128xbf16>
    %c0_3 = arith.constant 0 : index
    %c0_4 = arith.constant 0 : index
    %5 = vector.load %arg3[%c0_3, %c0_4] : memref<128x128xbf16, #tpu.memory_space<vmem>>, vector<128x128xbf16>
    %cst = arith.constant dense<0.000000e+00> : vector<64x128xf32>
    %6 = tpu.matmul %4, %5, %cst {dimension_numbers = #tpu.dot_dimension_numbers<[1], [0], [0], [1], [0, 0, 1, 1], [], []>} : vector<64x128xbf16>, vector<128x128xbf16>, vector<64x128xf32> -> vector<64x128xf32>
    %c0_5 = arith.constant 0 : index
    %c0_6 = arith.constant 0 : index
    %c0_7 = arith.constant 0 : index
    %7 = vector.load %arg4[%c0_5, %c0_6, %c0_7] : memref<1x64x128xf32, #tpu.memory_space<vmem>>, vector<1x64x128xf32>
    %8 = vector.shape_cast %7 : vector<1x64x128xf32> to vector<64x128xf32>
    %9 = vector.shape_cast %6 : vector<64x128xf32> to vector<1x64x128xf32>
    tpu.vector_store %arg4[%c0_5, %c0_6, %c0_7], %9 {strides = array<i32>} : memref<1x64x128xf32, #tpu.memory_space<vmem>>, vector<1x64x128xf32>,
    %c0_8 = arith.constant 0 : index
    %c0_9 = arith.constant 0 : index
    %10 = vector.load %arg7[%c0_8, %c0_9] : memref<1x128xf32, #tpu.memory_space<vmem>>, vector<1x128xf32>
    %cst_10 = arith.constant dense<0.000000e+00> : vector<128xf32>
    %11 = vector.multi_reduction <add>, %6, %cst_10 [0] : vector<64x128xf32> to vector<128xf32>
    %12 = vector.shape_cast %11 : vector<128xf32> to vector<1x128xf32>
    %13 = arith.addf %10, %12 : vector<1x128xf32>
    %c0_11 = arith.constant 0 : index
    %c0_12 = arith.constant 0 : index
    %14 = vector.load %arg7[%c0_11, %c0_12] : memref<1x128xf32, #tpu.memory_space<vmem>>, vector<1x128xf32>
    tpu.vector_store %arg7[%c0_11, %c0_12], %13 {strides = array<i32>} : memref<1x128xf32, #tpu.memory_space<vmem>>, vector<1x128xf32>,
    %c0_13 = arith.constant 0 : index
    %c0_14 = arith.constant 0 : index
    %15 = vector.load %arg8[%c0_13, %c0_14] : memref<1x128xf32, #tpu.memory_space<vmem>>, vector<1x128xf32>
    %16 = arith.mulf %6, %6 : vector<64x128xf32>
    %cst_15 = arith.constant dense<0.000000e+00> : vector<128xf32>
    %17 = vector.multi_reduction <add>, %16, %cst_15 [0] : vector<64x128xf32> to vector<128xf32>
    %18 = vector.shape_cast %17 : vector<128xf32> to vector<1x128xf32>
    %19 = arith.addf %15, %18 : vector<1x128xf32>
    %c0_16 = arith.constant 0 : index
    %c0_17 = arith.constant 0 : index
    %20 = vector.load %arg8[%c0_16, %c0_17] : memref<1x128xf32, #tpu.memory_space<vmem>>, vector<1x128xf32>
    tpu.vector_store %arg8[%c0_16, %c0_17], %19 {strides = array<i32>} : memref<1x128xf32, #tpu.memory_space<vmem>>, vector<1x128xf32>,
    %c0_i32_18 = arith.constant 0 : i32
    %21 = arith.cmpi eq, %arg1, %c0_i32_18 : i32
    %22 = arith.extui %21 : i1 to i32
    %c0_i32_19 = arith.constant 0 : i32
    %23 = arith.cmpi ne, %22, %c0_i32_19 : i32
    scf.if %23 {
      %c0_20 = arith.constant 0 : index
      %c0_21 = arith.constant 0 : index
      %24 = vector.load %arg7[%c0_20, %c0_21] : memref<1x128xf32, #tpu.memory_space<vmem>>, vector<1x128xf32>
      %c0_22 = arith.constant 0 : index
      %c0_23 = arith.constant 0 : index
      %c0_24 = arith.constant 0 : index
      %25 = vector.load %arg5[%c0_22, %c0_23, %c0_24] : memref<1x1x128xf32, #tpu.memory_space<vmem>>, vector<1x1x128xf32>
      %26 = vector.shape_cast %25 : vector<1x1x128xf32> to vector<1x128xf32>
      %27 = vector.shape_cast %24 : vector<1x128xf32> to vector<1x1x128xf32>
      tpu.vector_store %arg5[%c0_22, %c0_23, %c0_24], %27 {strides = array<i32>} : memref<1x1x128xf32, #tpu.memory_space<vmem>>, vector<1x1x128xf32>,
      %c0_25 = arith.constant 0 : index
      %c0_26 = arith.constant 0 : index
      %28 = vector.load %arg8[%c0_25, %c0_26] : memref<1x128xf32, #tpu.memory_space<vmem>>, vector<1x128xf32>
      %c0_27 = arith.constant 0 : index
      %c0_28 = arith.constant 0 : index
      %c0_29 = arith.constant 0 : index
      %29 = vector.load %arg6[%c0_27, %c0_28, %c0_29] : memref<1x1x128xf32, #tpu.memory_space<vmem>>, vector<1x1x128xf32>
      %30 = vector.shape_cast %29 : vector<1x1x128xf32> to vector<1x128xf32>
      %31 = vector.shape_cast %28 : vector<1x128xf32> to vector<1x1x128xf32>
      tpu.vector_store %arg6[%c0_27, %c0_28, %c0_29], %31 {strides = array<i32>} : memref<1x1x128xf32, #tpu.memory_space<vmem>>, vector<1x1x128xf32>,
    } else {
    }
    return
  }
  func.func @transform_0(%arg0: i32, %arg1: i32) -> (i32, i32, i32) {
    %c0_i32 = arith.constant 0 : i32
    %c0_i32_0 = arith.constant 0 : i32
    return %arg0, %arg1, %c0_i32 : i32, i32, i32
  }
  func.func @transform_1(%arg0: i32, %arg1: i32) -> (i32, i32) {
    %c0_i32 = arith.constant 0 : i32
    %c0_i32_0 = arith.constant 0 : i32
    %c0_i32_1 = arith.constant 0 : i32
    return %c0_i32, %c0_i32_0 : i32, i32
  }
  func.func @transform_2(%arg0: i32, %arg1: i32) -> (i32, i32, i32) {
    %c0_i32 = arith.constant 0 : i32
    %c0_i32_0 = arith.constant 0 : i32
    return %arg0, %arg1, %c0_i32 : i32, i32, i32
  }
  func.func @transform_3(%arg0: i32, %arg1: i32) -> (i32, i32, i32) {
    %c0_i32 = arith.constant 0 : i32
    %c0_i32_0 = arith.constant 0 : i32
    %c0_i32_1 = arith.constant 0 : i32
    return %arg0, %c0_i32, %c0_i32_0 : i32, i32, i32
  }
  func.func @transform_4(%arg0: i32, %arg1: i32) -> (i32, i32, i32) {
    %c0_i32 = arith.constant 0 : i32
    %c0_i32_0 = arith.constant 0 : i32
    %c0_i32_1 = arith.constant 0 : i32
    return %arg0, %c0_i32, %c0_i32_0 : i32, i32, i32
  }
}

module attributes {stable_mosaic.version = 11 : i64} {
  func.func @kernel(%arg0: i32, %arg1: i32, %arg2: memref<1x64x128xf32, #tpu.memory_space<vmem>>, %arg3: memref<1x1x128xf32, #tpu.memory_space<vmem>>, %arg4: memref<1x1x128xf32, #tpu.memory_space<vmem>>, %arg5: memref<1x128xf32, #tpu.memory_space<vmem>>, %arg6: memref<1x128xf32, #tpu.memory_space<vmem>>, %arg7: memref<1x64x128xf32, #tpu.memory_space<vmem>>) attributes {dimension_semantics = [#tpu.dimension_semantics<parallel>, #tpu.dimension_semantics<parallel>], iteration_bounds = array<i64: 2, 1>, scalar_prefetch = 0 : i64, scratch_operands = 0 : i64, tpu.core_type = #tpu.core_type<tc>, window_params = [{transform_indices = @transform_0, window_bounds = array<i64: 1, 64, 128>}, {transform_indices = @transform_1, window_bounds = array<i64: 1, 1, 128>}, {transform_indices = @transform_2, window_bounds = array<i64: 1, 1, 128>}, {pipeline_mode = #tpu.pipeline_mode<synchronous>, transform_indices = @transform_3, window_bounds = array<i64: 1, 128>}, {pipeline_mode = #tpu.pipeline_mode<synchronous>, transform_indices = @transform_4, window_bounds = array<i64: 1, 128>}, {transform_indices = @transform_5, window_bounds = array<i64: 1, 64, 128>}]} {
    %c0 = arith.constant 0 : index
    %c0_0 = arith.constant 0 : index
    %c0_1 = arith.constant 0 : index
    %0 = vector.load %arg3[%c0, %c0_0, %c0_1] : memref<1x1x128xf32, #tpu.memory_space<vmem>>, vector<1x1x128xf32>
    %1 = vector.shape_cast %0 : vector<1x1x128xf32> to vector<1x128xf32>
    %cst = arith.constant 1.562500e-02 : f32
    %2 = vector.broadcast %cst : f32 to vector<1x128xf32>
    %3 = arith.mulf %1, %2 : vector<1x128xf32>
    %c0_2 = arith.constant 0 : index
    %c0_3 = arith.constant 0 : index
    %c0_4 = arith.constant 0 : index
    %4 = vector.load %arg4[%c0_2, %c0_3, %c0_4] : memref<1x1x128xf32, #tpu.memory_space<vmem>>, vector<1x1x128xf32>
    %5 = vector.shape_cast %4 : vector<1x1x128xf32> to vector<1x128xf32>
    %cst_5 = arith.constant 1.562500e-02 : f32
    %6 = vector.broadcast %cst_5 : f32 to vector<1x128xf32>
    %7 = arith.mulf %5, %6 : vector<1x128xf32>
    %8 = arith.mulf %3, %3 : vector<1x128xf32>
    %9 = arith.subf %7, %8 : vector<1x128xf32>
    %cst_6 = arith.constant 0.000000e+00 : f32
    %10 = vector.broadcast %cst_6 : f32 to vector<1x128xf32>
    %11 = arith.maximumf %9, %10 : vector<1x128xf32>
    %c0_7 = arith.constant 0 : index
    %c0_8 = arith.constant 0 : index
    %12 = vector.load %arg5[%c0_7, %c0_8] : memref<1x128xf32, #tpu.memory_space<vmem>>, vector<1x128xf32>
    %cst_9 = arith.constant 9.99999974E-6 : f32
    %13 = vector.broadcast %cst_9 : f32 to vector<1x128xf32>
    %14 = arith.addf %11, %13 : vector<1x128xf32>
    %15 = math.rsqrt %14 : vector<1x128xf32>
    %16 = arith.mulf %12, %15 : vector<1x128xf32>
    %c0_10 = arith.constant 0 : index
    %c0_11 = arith.constant 0 : index
    %17 = vector.load %arg6[%c0_10, %c0_11] : memref<1x128xf32, #tpu.memory_space<vmem>>, vector<1x128xf32>
    %18 = arith.mulf %3, %16 : vector<1x128xf32>
    %19 = arith.subf %17, %18 : vector<1x128xf32>
    %c0_12 = arith.constant 0 : index
    %c0_13 = arith.constant 0 : index
    %c0_14 = arith.constant 0 : index
    %20 = vector.load %arg2[%c0_12, %c0_13, %c0_14] : memref<1x64x128xf32, #tpu.memory_space<vmem>>, vector<1x64x128xf32>
    %21 = vector.shape_cast %20 : vector<1x64x128xf32> to vector<64x128xf32>
    %22 = vector.broadcast %16 : vector<1x128xf32> to vector<64x128xf32>
    %23 = arith.mulf %21, %22 : vector<64x128xf32>
    %24 = vector.broadcast %19 : vector<1x128xf32> to vector<64x128xf32>
    %25 = arith.addf %23, %24 : vector<64x128xf32>
    %cst_15 = arith.constant 0.000000e+00 : f32
    %26 = vector.broadcast %cst_15 : f32 to vector<64x128xf32>
    %27 = arith.cmpf ogt, %25, %26 : vector<64x128xf32>
    %cst_16 = arith.constant 2.000000e-01 : f32
    %28 = vector.broadcast %cst_16 : f32 to vector<64x128xf32>
    %29 = arith.mulf %28, %25 : vector<64x128xf32>
    %30 = arith.select %27, %25, %29 : vector<64x128xi1>, vector<64x128xf32>
    %c0_17 = arith.constant 0 : index
    %c0_18 = arith.constant 0 : index
    %c0_19 = arith.constant 0 : index
    %31 = vector.load %arg7[%c0_17, %c0_18, %c0_19] : memref<1x64x128xf32, #tpu.memory_space<vmem>>, vector<1x64x128xf32>
    %32 = vector.shape_cast %31 : vector<1x64x128xf32> to vector<64x128xf32>
    %33 = vector.shape_cast %30 : vector<64x128xf32> to vector<1x64x128xf32>
    tpu.vector_store %arg7[%c0_17, %c0_18, %c0_19], %33 {strides = array<i32>} : memref<1x64x128xf32, #tpu.memory_space<vmem>>, vector<1x64x128xf32>,
    return
  }
  func.func @transform_0(%arg0: i32, %arg1: i32) -> (i32, i32, i32) {
    %c0_i32 = arith.constant 0 : i32
    %c0_i32_0 = arith.constant 0 : i32
    return %arg0, %arg1, %c0_i32 : i32, i32, i32
  }
  func.func @transform_1(%arg0: i32, %arg1: i32) -> (i32, i32, i32) {
    %c0_i32 = arith.constant 0 : i32
    %c0_i32_0 = arith.constant 0 : i32
    %c0_i32_1 = arith.constant 0 : i32
    return %arg0, %c0_i32, %c0_i32_0 : i32, i32, i32
  }
  func.func @transform_2(%arg0: i32, %arg1: i32) -> (i32, i32, i32) {
    %c0_i32 = arith.constant 0 : i32
    %c0_i32_0 = arith.constant 0 : i32
    %c0_i32_1 = arith.constant 0 : i32
    return %arg0, %c0_i32, %c0_i32_0 : i32, i32, i32
  }
  func.func @transform_3(%arg0: i32, %arg1: i32) -> (i32, i32) {
    %c0_i32 = arith.constant 0 : i32
    %c0_i32_0 = arith.constant 0 : i32
    %c0_i32_1 = arith.constant 0 : i32
    return %c0_i32, %c0_i32_0 : i32, i32
  }
  func.func @transform_4(%arg0: i32, %arg1: i32) -> (i32, i32) {
    %c0_i32 = arith.constant 0 : i32
    %c0_i32_0 = arith.constant 0 : i32
    %c0_i32_1 = arith.constant 0 : i32
    return %c0_i32, %c0_i32_0 : i32, i32
  }
  func.func @transform_5(%arg0: i32, %arg1: i32) -> (i32, i32, i32) {
    %c0_i32 = arith.constant 0 : i32
    %c0_i32_0 = arith.constant 0 : i32
    return %arg0, %arg1, %c0_i32 : i32, i32, i32
  }
}

module attributes {stable_mosaic.version = 11 : i64} {
  func.func @_mm_stats_kernel(%arg0: i32, %arg1: i32, %arg2: memref<1x16x256xbf16, #tpu.memory_space<vmem>>, %arg3: memref<256x128xbf16, #tpu.memory_space<vmem>>, %arg4: memref<1x16x128xf32, #tpu.memory_space<vmem>>, %arg5: memref<1x1x128xf32, #tpu.memory_space<vmem>>, %arg6: memref<1x1x128xf32, #tpu.memory_space<vmem>>, %arg7: memref<1x128xf32, #tpu.memory_space<vmem>>, %arg8: memref<1x128xf32, #tpu.memory_space<vmem>>) attributes {dimension_semantics = [#tpu.dimension_semantics<parallel>, #tpu.dimension_semantics<arbitrary>], iteration_bounds = array<i64: 2, 1>, scalar_prefetch = 0 : i64, scratch_operands = 2 : i64, tpu.core_type = #tpu.core_type<tc>, window_params = [{transform_indices = @transform_0, window_bounds = array<i64: 1, 16, 256>}, {pipeline_mode = #tpu.pipeline_mode<synchronous>, transform_indices = @transform_1, window_bounds = array<i64: 256, 128>}, {transform_indices = @transform_2, window_bounds = array<i64: 1, 16, 128>}, {transform_indices = @transform_3, window_bounds = array<i64: 1, 1, 128>}, {transform_indices = @transform_4, window_bounds = array<i64: 1, 1, 128>}]} {
    %c0_i32 = arith.constant 0 : i32
    %0 = arith.cmpi eq, %arg1, %c0_i32 : i32
    %1 = arith.extui %0 : i1 to i32
    %c0_i32_0 = arith.constant 0 : i32
    %2 = arith.cmpi ne, %1, %c0_i32_0 : i32
    scf.if %2 {
      %cst_20 = arith.constant 0.000000e+00 : f32
      %24 = vector.broadcast %cst_20 : f32 to vector<1x128xf32>
      %c0_21 = arith.constant 0 : index
      %c0_22 = arith.constant 0 : index
      %25 = vector.load %arg7[%c0_21, %c0_22] : memref<1x128xf32, #tpu.memory_space<vmem>>, vector<1x128xf32>
      tpu.vector_store %arg7[%c0_21, %c0_22], %24 {strides = array<i32>} : memref<1x128xf32, #tpu.memory_space<vmem>>, vector<1x128xf32>,
      %cst_23 = arith.constant 0.000000e+00 : f32
      %26 = vector.broadcast %cst_23 : f32 to vector<1x128xf32>
      %c0_24 = arith.constant 0 : index
      %c0_25 = arith.constant 0 : index
      %27 = vector.load %arg8[%c0_24, %c0_25] : memref<1x128xf32, #tpu.memory_space<vmem>>, vector<1x128xf32>
      tpu.vector_store %arg8[%c0_24, %c0_25], %26 {strides = array<i32>} : memref<1x128xf32, #tpu.memory_space<vmem>>, vector<1x128xf32>,
    } else {
    }
    %c0 = arith.constant 0 : index
    %c0_1 = arith.constant 0 : index
    %c0_2 = arith.constant 0 : index
    %3 = vector.load %arg2[%c0, %c0_1, %c0_2] : memref<1x16x256xbf16, #tpu.memory_space<vmem>>, vector<1x16x256xbf16>
    %4 = vector.shape_cast %3 : vector<1x16x256xbf16> to vector<16x256xbf16>
    %c0_3 = arith.constant 0 : index
    %c0_4 = arith.constant 0 : index
    %5 = vector.load %arg3[%c0_3, %c0_4] : memref<256x128xbf16, #tpu.memory_space<vmem>>, vector<256x128xbf16>
    %cst = arith.constant dense<0.000000e+00> : vector<16x128xf32>
    %6 = tpu.matmul %4, %5, %cst {dimension_numbers = #tpu.dot_dimension_numbers<[1], [0], [0], [1], [0, 0, 1, 1], [], []>} : vector<16x256xbf16>, vector<256x128xbf16>, vector<16x128xf32> -> vector<16x128xf32>
    %c0_5 = arith.constant 0 : index
    %c0_6 = arith.constant 0 : index
    %c0_7 = arith.constant 0 : index
    %7 = vector.load %arg4[%c0_5, %c0_6, %c0_7] : memref<1x16x128xf32, #tpu.memory_space<vmem>>, vector<1x16x128xf32>
    %8 = vector.shape_cast %7 : vector<1x16x128xf32> to vector<16x128xf32>
    %9 = vector.shape_cast %6 : vector<16x128xf32> to vector<1x16x128xf32>
    tpu.vector_store %arg4[%c0_5, %c0_6, %c0_7], %9 {strides = array<i32>} : memref<1x16x128xf32, #tpu.memory_space<vmem>>, vector<1x16x128xf32>,
    %c0_8 = arith.constant 0 : index
    %c0_9 = arith.constant 0 : index
    %10 = vector.load %arg7[%c0_8, %c0_9] : memref<1x128xf32, #tpu.memory_space<vmem>>, vector<1x128xf32>
    %cst_10 = arith.constant dense<0.000000e+00> : vector<128xf32>
    %11 = vector.multi_reduction <add>, %6, %cst_10 [0] : vector<16x128xf32> to vector<128xf32>
    %12 = vector.shape_cast %11 : vector<128xf32> to vector<1x128xf32>
    %13 = arith.addf %10, %12 : vector<1x128xf32>
    %c0_11 = arith.constant 0 : index
    %c0_12 = arith.constant 0 : index
    %14 = vector.load %arg7[%c0_11, %c0_12] : memref<1x128xf32, #tpu.memory_space<vmem>>, vector<1x128xf32>
    tpu.vector_store %arg7[%c0_11, %c0_12], %13 {strides = array<i32>} : memref<1x128xf32, #tpu.memory_space<vmem>>, vector<1x128xf32>,
    %c0_13 = arith.constant 0 : index
    %c0_14 = arith.constant 0 : index
    %15 = vector.load %arg8[%c0_13, %c0_14] : memref<1x128xf32, #tpu.memory_space<vmem>>, vector<1x128xf32>
    %16 = arith.mulf %6, %6 : vector<16x128xf32>
    %cst_15 = arith.constant dense<0.000000e+00> : vector<128xf32>
    %17 = vector.multi_reduction <add>, %16, %cst_15 [0] : vector<16x128xf32> to vector<128xf32>
    %18 = vector.shape_cast %17 : vector<128xf32> to vector<1x128xf32>
    %19 = arith.addf %15, %18 : vector<1x128xf32>
    %c0_16 = arith.constant 0 : index
    %c0_17 = arith.constant 0 : index
    %20 = vector.load %arg8[%c0_16, %c0_17] : memref<1x128xf32, #tpu.memory_space<vmem>>, vector<1x128xf32>
    tpu.vector_store %arg8[%c0_16, %c0_17], %19 {strides = array<i32>} : memref<1x128xf32, #tpu.memory_space<vmem>>, vector<1x128xf32>,
    %c0_i32_18 = arith.constant 0 : i32
    %21 = arith.cmpi eq, %arg1, %c0_i32_18 : i32
    %22 = arith.extui %21 : i1 to i32
    %c0_i32_19 = arith.constant 0 : i32
    %23 = arith.cmpi ne, %22, %c0_i32_19 : i32
    scf.if %23 {
      %c0_20 = arith.constant 0 : index
      %c0_21 = arith.constant 0 : index
      %24 = vector.load %arg7[%c0_20, %c0_21] : memref<1x128xf32, #tpu.memory_space<vmem>>, vector<1x128xf32>
      %c0_22 = arith.constant 0 : index
      %c0_23 = arith.constant 0 : index
      %c0_24 = arith.constant 0 : index
      %25 = vector.load %arg5[%c0_22, %c0_23, %c0_24] : memref<1x1x128xf32, #tpu.memory_space<vmem>>, vector<1x1x128xf32>
      %26 = vector.shape_cast %25 : vector<1x1x128xf32> to vector<1x128xf32>
      %27 = vector.shape_cast %24 : vector<1x128xf32> to vector<1x1x128xf32>
      tpu.vector_store %arg5[%c0_22, %c0_23, %c0_24], %27 {strides = array<i32>} : memref<1x1x128xf32, #tpu.memory_space<vmem>>, vector<1x1x128xf32>,
      %c0_25 = arith.constant 0 : index
      %c0_26 = arith.constant 0 : index
      %28 = vector.load %arg8[%c0_25, %c0_26] : memref<1x128xf32, #tpu.memory_space<vmem>>, vector<1x128xf32>
      %c0_27 = arith.constant 0 : index
      %c0_28 = arith.constant 0 : index
      %c0_29 = arith.constant 0 : index
      %29 = vector.load %arg6[%c0_27, %c0_28, %c0_29] : memref<1x1x128xf32, #tpu.memory_space<vmem>>, vector<1x1x128xf32>
      %30 = vector.shape_cast %29 : vector<1x1x128xf32> to vector<1x128xf32>
      %31 = vector.shape_cast %28 : vector<1x128xf32> to vector<1x1x128xf32>
      tpu.vector_store %arg6[%c0_27, %c0_28, %c0_29], %31 {strides = array<i32>} : memref<1x1x128xf32, #tpu.memory_space<vmem>>, vector<1x1x128xf32>,
    } else {
    }
    return
  }
  func.func @transform_0(%arg0: i32, %arg1: i32) -> (i32, i32, i32) {
    %c0_i32 = arith.constant 0 : i32
    %c0_i32_0 = arith.constant 0 : i32
    return %arg0, %arg1, %c0_i32 : i32, i32, i32
  }
  func.func @transform_1(%arg0: i32, %arg1: i32) -> (i32, i32) {
    %c0_i32 = arith.constant 0 : i32
    %c0_i32_0 = arith.constant 0 : i32
    %c0_i32_1 = arith.constant 0 : i32
    return %c0_i32, %c0_i32_0 : i32, i32
  }
  func.func @transform_2(%arg0: i32, %arg1: i32) -> (i32, i32, i32) {
    %c0_i32 = arith.constant 0 : i32
    %c0_i32_0 = arith.constant 0 : i32
    return %arg0, %arg1, %c0_i32 : i32, i32, i32
  }
  func.func @transform_3(%arg0: i32, %arg1: i32) -> (i32, i32, i32) {
    %c0_i32 = arith.constant 0 : i32
    %c0_i32_0 = arith.constant 0 : i32
    %c0_i32_1 = arith.constant 0 : i32
    return %arg0, %c0_i32, %c0_i32_0 : i32, i32, i32
  }
  func.func @transform_4(%arg0: i32, %arg1: i32) -> (i32, i32, i32) {
    %c0_i32 = arith.constant 0 : i32
    %c0_i32_0 = arith.constant 0 : i32
    %c0_i32_1 = arith.constant 0 : i32
    return %arg0, %c0_i32, %c0_i32_0 : i32, i32, i32
  }
}

module attributes {stable_mosaic.version = 11 : i64} {
  func.func @kernel(%arg0: i32, %arg1: i32, %arg2: memref<1x16x128xf32, #tpu.memory_space<vmem>>, %arg3: memref<1x1x128xf32, #tpu.memory_space<vmem>>, %arg4: memref<1x1x128xf32, #tpu.memory_space<vmem>>, %arg5: memref<1x128xf32, #tpu.memory_space<vmem>>, %arg6: memref<1x128xf32, #tpu.memory_space<vmem>>, %arg7: memref<1x16x128xf32, #tpu.memory_space<vmem>>) attributes {dimension_semantics = [#tpu.dimension_semantics<parallel>, #tpu.dimension_semantics<parallel>], iteration_bounds = array<i64: 2, 1>, scalar_prefetch = 0 : i64, scratch_operands = 0 : i64, tpu.core_type = #tpu.core_type<tc>, window_params = [{transform_indices = @transform_0, window_bounds = array<i64: 1, 16, 128>}, {transform_indices = @transform_1, window_bounds = array<i64: 1, 1, 128>}, {transform_indices = @transform_2, window_bounds = array<i64: 1, 1, 128>}, {pipeline_mode = #tpu.pipeline_mode<synchronous>, transform_indices = @transform_3, window_bounds = array<i64: 1, 128>}, {pipeline_mode = #tpu.pipeline_mode<synchronous>, transform_indices = @transform_4, window_bounds = array<i64: 1, 128>}, {transform_indices = @transform_5, window_bounds = array<i64: 1, 16, 128>}]} {
    %c0 = arith.constant 0 : index
    %c0_0 = arith.constant 0 : index
    %c0_1 = arith.constant 0 : index
    %0 = vector.load %arg3[%c0, %c0_0, %c0_1] : memref<1x1x128xf32, #tpu.memory_space<vmem>>, vector<1x1x128xf32>
    %1 = vector.shape_cast %0 : vector<1x1x128xf32> to vector<1x128xf32>
    %cst = arith.constant 6.250000e-02 : f32
    %2 = vector.broadcast %cst : f32 to vector<1x128xf32>
    %3 = arith.mulf %1, %2 : vector<1x128xf32>
    %c0_2 = arith.constant 0 : index
    %c0_3 = arith.constant 0 : index
    %c0_4 = arith.constant 0 : index
    %4 = vector.load %arg4[%c0_2, %c0_3, %c0_4] : memref<1x1x128xf32, #tpu.memory_space<vmem>>, vector<1x1x128xf32>
    %5 = vector.shape_cast %4 : vector<1x1x128xf32> to vector<1x128xf32>
    %cst_5 = arith.constant 6.250000e-02 : f32
    %6 = vector.broadcast %cst_5 : f32 to vector<1x128xf32>
    %7 = arith.mulf %5, %6 : vector<1x128xf32>
    %8 = arith.mulf %3, %3 : vector<1x128xf32>
    %9 = arith.subf %7, %8 : vector<1x128xf32>
    %cst_6 = arith.constant 0.000000e+00 : f32
    %10 = vector.broadcast %cst_6 : f32 to vector<1x128xf32>
    %11 = arith.maximumf %9, %10 : vector<1x128xf32>
    %c0_7 = arith.constant 0 : index
    %c0_8 = arith.constant 0 : index
    %12 = vector.load %arg5[%c0_7, %c0_8] : memref<1x128xf32, #tpu.memory_space<vmem>>, vector<1x128xf32>
    %cst_9 = arith.constant 9.99999974E-6 : f32
    %13 = vector.broadcast %cst_9 : f32 to vector<1x128xf32>
    %14 = arith.addf %11, %13 : vector<1x128xf32>
    %15 = math.rsqrt %14 : vector<1x128xf32>
    %16 = arith.mulf %12, %15 : vector<1x128xf32>
    %c0_10 = arith.constant 0 : index
    %c0_11 = arith.constant 0 : index
    %17 = vector.load %arg6[%c0_10, %c0_11] : memref<1x128xf32, #tpu.memory_space<vmem>>, vector<1x128xf32>
    %18 = arith.mulf %3, %16 : vector<1x128xf32>
    %19 = arith.subf %17, %18 : vector<1x128xf32>
    %c0_12 = arith.constant 0 : index
    %c0_13 = arith.constant 0 : index
    %c0_14 = arith.constant 0 : index
    %20 = vector.load %arg2[%c0_12, %c0_13, %c0_14] : memref<1x16x128xf32, #tpu.memory_space<vmem>>, vector<1x16x128xf32>
    %21 = vector.shape_cast %20 : vector<1x16x128xf32> to vector<16x128xf32>
    %22 = vector.broadcast %16 : vector<1x128xf32> to vector<16x128xf32>
    %23 = arith.mulf %21, %22 : vector<16x128xf32>
    %24 = vector.broadcast %19 : vector<1x128xf32> to vector<16x128xf32>
    %25 = arith.addf %23, %24 : vector<16x128xf32>
    %cst_15 = arith.constant 0.000000e+00 : f32
    %26 = vector.broadcast %cst_15 : f32 to vector<16x128xf32>
    %27 = arith.cmpf ogt, %25, %26 : vector<16x128xf32>
    %cst_16 = arith.constant 2.000000e-01 : f32
    %28 = vector.broadcast %cst_16 : f32 to vector<16x128xf32>
    %29 = arith.mulf %28, %25 : vector<16x128xf32>
    %30 = arith.select %27, %25, %29 : vector<16x128xi1>, vector<16x128xf32>
    %c0_17 = arith.constant 0 : index
    %c0_18 = arith.constant 0 : index
    %c0_19 = arith.constant 0 : index
    %31 = vector.load %arg7[%c0_17, %c0_18, %c0_19] : memref<1x16x128xf32, #tpu.memory_space<vmem>>, vector<1x16x128xf32>
    %32 = vector.shape_cast %31 : vector<1x16x128xf32> to vector<16x128xf32>
    %33 = vector.shape_cast %30 : vector<16x128xf32> to vector<1x16x128xf32>
    tpu.vector_store %arg7[%c0_17, %c0_18, %c0_19], %33 {strides = array<i32>} : memref<1x16x128xf32, #tpu.memory_space<vmem>>, vector<1x16x128xf32>,
    return
  }
  func.func @transform_0(%arg0: i32, %arg1: i32) -> (i32, i32, i32) {
    %c0_i32 = arith.constant 0 : i32
    %c0_i32_0 = arith.constant 0 : i32
    return %arg0, %arg1, %c0_i32 : i32, i32, i32
  }
  func.func @transform_1(%arg0: i32, %arg1: i32) -> (i32, i32, i32) {
    %c0_i32 = arith.constant 0 : i32
    %c0_i32_0 = arith.constant 0 : i32
    %c0_i32_1 = arith.constant 0 : i32
    return %arg0, %c0_i32, %c0_i32_0 : i32, i32, i32
  }
  func.func @transform_2(%arg0: i32, %arg1: i32) -> (i32, i32, i32) {
    %c0_i32 = arith.constant 0 : i32
    %c0_i32_0 = arith.constant 0 : i32
    %c0_i32_1 = arith.constant 0 : i32
    return %arg0, %c0_i32, %c0_i32_0 : i32, i32, i32
  }
  func.func @transform_3(%arg0: i32, %arg1: i32) -> (i32, i32) {
    %c0_i32 = arith.constant 0 : i32
    %c0_i32_0 = arith.constant 0 : i32
    %c0_i32_1 = arith.constant 0 : i32
    return %c0_i32, %c0_i32_0 : i32, i32
  }
  func.func @transform_4(%arg0: i32, %arg1: i32) -> (i32, i32) {
    %c0_i32 = arith.constant 0 : i32
    %c0_i32_0 = arith.constant 0 : i32
    %c0_i32_1 = arith.constant 0 : i32
    return %c0_i32, %c0_i32_0 : i32, i32
  }
  func.func @transform_5(%arg0: i32, %arg1: i32) -> (i32, i32, i32) {
    %c0_i32 = arith.constant 0 : i32
    %c0_i32_0 = arith.constant 0 : i32
    return %arg0, %arg1, %c0_i32 : i32, i32, i32
  }
}

module attributes {stable_mosaic.version = 11 : i64} {
  func.func @kernel(%arg0: i32, %arg1: i32, %arg2: memref<1x16x128xf32, #tpu.memory_space<vmem>>, %arg3: memref<1x1x128xf32, #tpu.memory_space<vmem>>, %arg4: memref<1x1x128xf32, #tpu.memory_space<vmem>>, %arg5: memref<1x128xf32, #tpu.memory_space<vmem>>, %arg6: memref<1x128xf32, #tpu.memory_space<vmem>>, %arg7: memref<1x16x128xf32, #tpu.memory_space<vmem>>) attributes {dimension_semantics = [#tpu.dimension_semantics<parallel>, #tpu.dimension_semantics<parallel>], iteration_bounds = array<i64: 2, 1>, scalar_prefetch = 0 : i64, scratch_operands = 0 : i64, tpu.core_type = #tpu.core_type<tc>, window_params = [{transform_indices = @transform_0, window_bounds = array<i64: 1, 16, 128>}, {transform_indices = @transform_1, window_bounds = array<i64: 1, 1, 128>}, {transform_indices = @transform_2, window_bounds = array<i64: 1, 1, 128>}, {pipeline_mode = #tpu.pipeline_mode<synchronous>, transform_indices = @transform_3, window_bounds = array<i64: 1, 128>}, {pipeline_mode = #tpu.pipeline_mode<synchronous>, transform_indices = @transform_4, window_bounds = array<i64: 1, 128>}, {transform_indices = @transform_5, window_bounds = array<i64: 1, 16, 128>}]} {
    %c0 = arith.constant 0 : index
    %c0_0 = arith.constant 0 : index
    %c0_1 = arith.constant 0 : index
    %0 = vector.load %arg3[%c0, %c0_0, %c0_1] : memref<1x1x128xf32, #tpu.memory_space<vmem>>, vector<1x1x128xf32>
    %1 = vector.shape_cast %0 : vector<1x1x128xf32> to vector<1x128xf32>
    %cst = arith.constant 0.111111112 : f32
    %2 = vector.broadcast %cst : f32 to vector<1x128xf32>
    %3 = arith.mulf %1, %2 : vector<1x128xf32>
    %c0_2 = arith.constant 0 : index
    %c0_3 = arith.constant 0 : index
    %c0_4 = arith.constant 0 : index
    %4 = vector.load %arg4[%c0_2, %c0_3, %c0_4] : memref<1x1x128xf32, #tpu.memory_space<vmem>>, vector<1x1x128xf32>
    %5 = vector.shape_cast %4 : vector<1x1x128xf32> to vector<1x128xf32>
    %cst_5 = arith.constant 0.111111112 : f32
    %6 = vector.broadcast %cst_5 : f32 to vector<1x128xf32>
    %7 = arith.mulf %5, %6 : vector<1x128xf32>
    %8 = arith.mulf %3, %3 : vector<1x128xf32>
    %9 = arith.subf %7, %8 : vector<1x128xf32>
    %cst_6 = arith.constant 0.000000e+00 : f32
    %10 = vector.broadcast %cst_6 : f32 to vector<1x128xf32>
    %11 = arith.maximumf %9, %10 : vector<1x128xf32>
    %c0_7 = arith.constant 0 : index
    %c0_8 = arith.constant 0 : index
    %12 = vector.load %arg5[%c0_7, %c0_8] : memref<1x128xf32, #tpu.memory_space<vmem>>, vector<1x128xf32>
    %cst_9 = arith.constant 9.99999974E-6 : f32
    %13 = vector.broadcast %cst_9 : f32 to vector<1x128xf32>
    %14 = arith.addf %11, %13 : vector<1x128xf32>
    %15 = math.rsqrt %14 : vector<1x128xf32>
    %16 = arith.mulf %12, %15 : vector<1x128xf32>
    %c0_10 = arith.constant 0 : index
    %c0_11 = arith.constant 0 : index
    %17 = vector.load %arg6[%c0_10, %c0_11] : memref<1x128xf32, #tpu.memory_space<vmem>>, vector<1x128xf32>
    %18 = arith.mulf %3, %16 : vector<1x128xf32>
    %19 = arith.subf %17, %18 : vector<1x128xf32>
    %c0_12 = arith.constant 0 : index
    %c0_13 = arith.constant 0 : index
    %c0_14 = arith.constant 0 : index
    %20 = vector.load %arg2[%c0_12, %c0_13, %c0_14] : memref<1x16x128xf32, #tpu.memory_space<vmem>>, vector<1x16x128xf32>
    %21 = vector.shape_cast %20 : vector<1x16x128xf32> to vector<16x128xf32>
    %22 = vector.broadcast %16 : vector<1x128xf32> to vector<16x128xf32>
    %23 = arith.mulf %21, %22 : vector<16x128xf32>
    %24 = vector.broadcast %19 : vector<1x128xf32> to vector<16x128xf32>
    %25 = arith.addf %23, %24 : vector<16x128xf32>
    %cst_15 = arith.constant 0.000000e+00 : f32
    %26 = vector.broadcast %cst_15 : f32 to vector<16x128xf32>
    %27 = arith.cmpf ogt, %25, %26 : vector<16x128xf32>
    %cst_16 = arith.constant 2.000000e-01 : f32
    %28 = vector.broadcast %cst_16 : f32 to vector<16x128xf32>
    %29 = arith.mulf %28, %25 : vector<16x128xf32>
    %30 = arith.select %27, %25, %29 : vector<16x128xi1>, vector<16x128xf32>
    %c0_17 = arith.constant 0 : index
    %c0_18 = arith.constant 0 : index
    %c0_19 = arith.constant 0 : index
    %31 = vector.load %arg7[%c0_17, %c0_18, %c0_19] : memref<1x16x128xf32, #tpu.memory_space<vmem>>, vector<1x16x128xf32>
    %32 = vector.shape_cast %31 : vector<1x16x128xf32> to vector<16x128xf32>
    %33 = vector.shape_cast %30 : vector<16x128xf32> to vector<1x16x128xf32>
    tpu.vector_store %arg7[%c0_17, %c0_18, %c0_19], %33 {strides = array<i32>} : memref<1x16x128xf32, #tpu.memory_space<vmem>>, vector<1x16x128xf32>,
    return
  }
  func.func @transform_0(%arg0: i32, %arg1: i32) -> (i32, i32, i32) {
    %c0_i32 = arith.constant 0 : i32
    %c0_i32_0 = arith.constant 0 : i32
    return %arg0, %arg1, %c0_i32 : i32, i32, i32
  }
  func.func @transform_1(%arg0: i32, %arg1: i32) -> (i32, i32, i32) {
    %c0_i32 = arith.constant 0 : i32
    %c0_i32_0 = arith.constant 0 : i32
    %c0_i32_1 = arith.constant 0 : i32
    return %arg0, %c0_i32, %c0_i32_0 : i32, i32, i32
  }
  func.func @transform_2(%arg0: i32, %arg1: i32) -> (i32, i32, i32) {
    %c0_i32 = arith.constant 0 : i32
    %c0_i32_0 = arith.constant 0 : i32
    %c0_i32_1 = arith.constant 0 : i32
    return %arg0, %c0_i32, %c0_i32_0 : i32, i32, i32
  }
  func.func @transform_3(%arg0: i32, %arg1: i32) -> (i32, i32) {
    %c0_i32 = arith.constant 0 : i32
    %c0_i32_0 = arith.constant 0 : i32
    %c0_i32_1 = arith.constant 0 : i32
    return %c0_i32, %c0_i32_0 : i32, i32
  }
  func.func @transform_4(%arg0: i32, %arg1: i32) -> (i32, i32) {
    %c0_i32 = arith.constant 0 : i32
    %c0_i32_0 = arith.constant 0 : i32
    %c0_i32_1 = arith.constant 0 : i32
    return %c0_i32, %c0_i32_0 : i32, i32
  }
  func.func @transform_5(%arg0: i32, %arg1: i32) -> (i32, i32, i32) {
    %c0_i32 = arith.constant 0 : i32
    %c0_i32_0 = arith.constant 0 : i32
    return %arg0, %arg1, %c0_i32 : i32, i32, i32
  }
}

module attributes {stable_mosaic.version = 11 : i64} {
  func.func @_mm_stats_kernel(%arg0: i32, %arg1: i32, %arg2: memref<1x16x512xbf16, #tpu.memory_space<vmem>>, %arg3: memref<512x128xbf16, #tpu.memory_space<vmem>>, %arg4: memref<1x16x128xf32, #tpu.memory_space<vmem>>, %arg5: memref<1x1x128xf32, #tpu.memory_space<vmem>>, %arg6: memref<1x1x128xf32, #tpu.memory_space<vmem>>, %arg7: memref<1x128xf32, #tpu.memory_space<vmem>>, %arg8: memref<1x128xf32, #tpu.memory_space<vmem>>) attributes {dimension_semantics = [#tpu.dimension_semantics<parallel>, #tpu.dimension_semantics<arbitrary>], iteration_bounds = array<i64: 2, 1>, scalar_prefetch = 0 : i64, scratch_operands = 2 : i64, tpu.core_type = #tpu.core_type<tc>, window_params = [{transform_indices = @transform_0, window_bounds = array<i64: 1, 16, 512>}, {pipeline_mode = #tpu.pipeline_mode<synchronous>, transform_indices = @transform_1, window_bounds = array<i64: 512, 128>}, {transform_indices = @transform_2, window_bounds = array<i64: 1, 16, 128>}, {transform_indices = @transform_3, window_bounds = array<i64: 1, 1, 128>}, {transform_indices = @transform_4, window_bounds = array<i64: 1, 1, 128>}]} {
    %c0_i32 = arith.constant 0 : i32
    %0 = arith.cmpi eq, %arg1, %c0_i32 : i32
    %1 = arith.extui %0 : i1 to i32
    %c0_i32_0 = arith.constant 0 : i32
    %2 = arith.cmpi ne, %1, %c0_i32_0 : i32
    scf.if %2 {
      %cst_20 = arith.constant 0.000000e+00 : f32
      %24 = vector.broadcast %cst_20 : f32 to vector<1x128xf32>
      %c0_21 = arith.constant 0 : index
      %c0_22 = arith.constant 0 : index
      %25 = vector.load %arg7[%c0_21, %c0_22] : memref<1x128xf32, #tpu.memory_space<vmem>>, vector<1x128xf32>
      tpu.vector_store %arg7[%c0_21, %c0_22], %24 {strides = array<i32>} : memref<1x128xf32, #tpu.memory_space<vmem>>, vector<1x128xf32>,
      %cst_23 = arith.constant 0.000000e+00 : f32
      %26 = vector.broadcast %cst_23 : f32 to vector<1x128xf32>
      %c0_24 = arith.constant 0 : index
      %c0_25 = arith.constant 0 : index
      %27 = vector.load %arg8[%c0_24, %c0_25] : memref<1x128xf32, #tpu.memory_space<vmem>>, vector<1x128xf32>
      tpu.vector_store %arg8[%c0_24, %c0_25], %26 {strides = array<i32>} : memref<1x128xf32, #tpu.memory_space<vmem>>, vector<1x128xf32>,
    } else {
    }
    %c0 = arith.constant 0 : index
    %c0_1 = arith.constant 0 : index
    %c0_2 = arith.constant 0 : index
    %3 = vector.load %arg2[%c0, %c0_1, %c0_2] : memref<1x16x512xbf16, #tpu.memory_space<vmem>>, vector<1x16x512xbf16>
    %4 = vector.shape_cast %3 : vector<1x16x512xbf16> to vector<16x512xbf16>
    %c0_3 = arith.constant 0 : index
    %c0_4 = arith.constant 0 : index
    %5 = vector.load %arg3[%c0_3, %c0_4] : memref<512x128xbf16, #tpu.memory_space<vmem>>, vector<512x128xbf16>
    %cst = arith.constant dense<0.000000e+00> : vector<16x128xf32>
    %6 = tpu.matmul %4, %5, %cst {dimension_numbers = #tpu.dot_dimension_numbers<[1], [0], [0], [1], [0, 0, 1, 1], [], []>} : vector<16x512xbf16>, vector<512x128xbf16>, vector<16x128xf32> -> vector<16x128xf32>
    %c0_5 = arith.constant 0 : index
    %c0_6 = arith.constant 0 : index
    %c0_7 = arith.constant 0 : index
    %7 = vector.load %arg4[%c0_5, %c0_6, %c0_7] : memref<1x16x128xf32, #tpu.memory_space<vmem>>, vector<1x16x128xf32>
    %8 = vector.shape_cast %7 : vector<1x16x128xf32> to vector<16x128xf32>
    %9 = vector.shape_cast %6 : vector<16x128xf32> to vector<1x16x128xf32>
    tpu.vector_store %arg4[%c0_5, %c0_6, %c0_7], %9 {strides = array<i32>} : memref<1x16x128xf32, #tpu.memory_space<vmem>>, vector<1x16x128xf32>,
    %c0_8 = arith.constant 0 : index
    %c0_9 = arith.constant 0 : index
    %10 = vector.load %arg7[%c0_8, %c0_9] : memref<1x128xf32, #tpu.memory_space<vmem>>, vector<1x128xf32>
    %cst_10 = arith.constant dense<0.000000e+00> : vector<128xf32>
    %11 = vector.multi_reduction <add>, %6, %cst_10 [0] : vector<16x128xf32> to vector<128xf32>
    %12 = vector.shape_cast %11 : vector<128xf32> to vector<1x128xf32>
    %13 = arith.addf %10, %12 : vector<1x128xf32>
    %c0_11 = arith.constant 0 : index
    %c0_12 = arith.constant 0 : index
    %14 = vector.load %arg7[%c0_11, %c0_12] : memref<1x128xf32, #tpu.memory_space<vmem>>, vector<1x128xf32>
    tpu.vector_store %arg7[%c0_11, %c0_12], %13 {strides = array<i32>} : memref<1x128xf32, #tpu.memory_space<vmem>>, vector<1x128xf32>,
    %c0_13 = arith.constant 0 : index
    %c0_14 = arith.constant 0 : index
    %15 = vector.load %arg8[%c0_13, %c0_14] : memref<1x128xf32, #tpu.memory_space<vmem>>, vector<1x128xf32>
    %16 = arith.mulf %6, %6 : vector<16x128xf32>
    %cst_15 = arith.constant dense<0.000000e+00> : vector<128xf32>
    %17 = vector.multi_reduction <add>, %16, %cst_15 [0] : vector<16x128xf32> to vector<128xf32>
    %18 = vector.shape_cast %17 : vector<128xf32> to vector<1x128xf32>
    %19 = arith.addf %15, %18 : vector<1x128xf32>
    %c0_16 = arith.constant 0 : index
    %c0_17 = arith.constant 0 : index
    %20 = vector.load %arg8[%c0_16, %c0_17] : memref<1x128xf32, #tpu.memory_space<vmem>>, vector<1x128xf32>
    tpu.vector_store %arg8[%c0_16, %c0_17], %19 {strides = array<i32>} : memref<1x128xf32, #tpu.memory_space<vmem>>, vector<1x128xf32>,
    %c0_i32_18 = arith.constant 0 : i32
    %21 = arith.cmpi eq, %arg1, %c0_i32_18 : i32
    %22 = arith.extui %21 : i1 to i32
    %c0_i32_19 = arith.constant 0 : i32
    %23 = arith.cmpi ne, %22, %c0_i32_19 : i32
    scf.if %23 {
      %c0_20 = arith.constant 0 : index
      %c0_21 = arith.constant 0 : index
      %24 = vector.load %arg7[%c0_20, %c0_21] : memref<1x128xf32, #tpu.memory_space<vmem>>, vector<1x128xf32>
      %c0_22 = arith.constant 0 : index
      %c0_23 = arith.constant 0 : index
      %c0_24 = arith.constant 0 : index
      %25 = vector.load %arg5[%c0_22, %c0_23, %c0_24] : memref<1x1x128xf32, #tpu.memory_space<vmem>>, vector<1x1x128xf32>
      %26 = vector.shape_cast %25 : vector<1x1x128xf32> to vector<1x128xf32>
      %27 = vector.shape_cast %24 : vector<1x128xf32> to vector<1x1x128xf32>
      tpu.vector_store %arg5[%c0_22, %c0_23, %c0_24], %27 {strides = array<i32>} : memref<1x1x128xf32, #tpu.memory_space<vmem>>, vector<1x1x128xf32>,
      %c0_25 = arith.constant 0 : index
      %c0_26 = arith.constant 0 : index
      %28 = vector.load %arg8[%c0_25, %c0_26] : memref<1x128xf32, #tpu.memory_space<vmem>>, vector<1x128xf32>
      %c0_27 = arith.constant 0 : index
      %c0_28 = arith.constant 0 : index
      %c0_29 = arith.constant 0 : index
      %29 = vector.load %arg6[%c0_27, %c0_28, %c0_29] : memref<1x1x128xf32, #tpu.memory_space<vmem>>, vector<1x1x128xf32>
      %30 = vector.shape_cast %29 : vector<1x1x128xf32> to vector<1x128xf32>
      %31 = vector.shape_cast %28 : vector<1x128xf32> to vector<1x1x128xf32>
      tpu.vector_store %arg6[%c0_27, %c0_28, %c0_29], %31 {strides = array<i32>} : memref<1x1x128xf32, #tpu.memory_space<vmem>>, vector<1x1x128xf32>,
    } else {
    }
    return
  }
  func.func @transform_0(%arg0: i32, %arg1: i32) -> (i32, i32, i32) {
    %c0_i32 = arith.constant 0 : i32
    %c0_i32_0 = arith.constant 0 : i32
    return %arg0, %arg1, %c0_i32 : i32, i32, i32
  }
  func.func @transform_1(%arg0: i32, %arg1: i32) -> (i32, i32) {
    %c0_i32 = arith.constant 0 : i32
    %c0_i32_0 = arith.constant 0 : i32
    %c0_i32_1 = arith.constant 0 : i32
    return %c0_i32, %c0_i32_0 : i32, i32
  }
  func.func @transform_2(%arg0: i32, %arg1: i32) -> (i32, i32, i32) {
    %c0_i32 = arith.constant 0 : i32
    %c0_i32_0 = arith.constant 0 : i32
    return %arg0, %arg1, %c0_i32 : i32, i32, i32
  }
  func.func @transform_3(%arg0: i32, %arg1: i32) -> (i32, i32, i32) {
    %c0_i32 = arith.constant 0 : i32
    %c0_i32_0 = arith.constant 0 : i32
    %c0_i32_1 = arith.constant 0 : i32
    return %arg0, %c0_i32, %c0_i32_0 : i32, i32, i32
  }
  func.func @transform_4(%arg0: i32, %arg1: i32) -> (i32, i32, i32) {
    %c0_i32 = arith.constant 0 : i32
    %c0_i32_0 = arith.constant 0 : i32
    %c0_i32_1 = arith.constant 0 : i32
    return %arg0, %c0_i32, %c0_i32_0 : i32, i32, i32
  }
}

module attributes {stable_mosaic.version = 11 : i64} {
  func.func @kernel(%arg0: i32, %arg1: memref<8x1024xbf16, #tpu.memory_space<vmem>>, %arg2: memref<1024x128xbf16, #tpu.memory_space<vmem>>, %arg3: memref<1x128xf32, #tpu.memory_space<vmem>>, %arg4: memref<8x128xf32, #tpu.memory_space<vmem>>) attributes {dimension_semantics = [#tpu.dimension_semantics<parallel>], iteration_bounds = array<i64: 1>, scalar_prefetch = 0 : i64, scratch_operands = 0 : i64, tpu.core_type = #tpu.core_type<tc>, window_params = [{transform_indices = @transform_0, window_bounds = array<i64: 8, 1024>}, {pipeline_mode = #tpu.pipeline_mode<synchronous>, transform_indices = @transform_1, window_bounds = array<i64: 1024, 128>}, {pipeline_mode = #tpu.pipeline_mode<synchronous>, transform_indices = @transform_2, window_bounds = array<i64: 1, 128>}, {transform_indices = @transform_3, window_bounds = array<i64: 8, 128>}]} {
    %c0 = arith.constant 0 : index
    %c0_0 = arith.constant 0 : index
    %0 = vector.load %arg1[%c0, %c0_0] : memref<8x1024xbf16, #tpu.memory_space<vmem>>, vector<8x1024xbf16>
    %c0_1 = arith.constant 0 : index
    %c0_2 = arith.constant 0 : index
    %1 = vector.load %arg2[%c0_1, %c0_2] : memref<1024x128xbf16, #tpu.memory_space<vmem>>, vector<1024x128xbf16>
    %cst = arith.constant dense<0.000000e+00> : vector<8x128xf32>
    %2 = tpu.matmul %0, %1, %cst {dimension_numbers = #tpu.dot_dimension_numbers<[1], [0], [0], [1], [0, 0, 1, 1], [], []>} : vector<8x1024xbf16>, vector<1024x128xbf16>, vector<8x128xf32> -> vector<8x128xf32>
    %c0_3 = arith.constant 0 : index
    %c0_4 = arith.constant 0 : index
    %3 = vector.load %arg3[%c0_3, %c0_4] : memref<1x128xf32, #tpu.memory_space<vmem>>, vector<1x128xf32>
    %4 = vector.broadcast %3 : vector<1x128xf32> to vector<8x128xf32>
    %5 = arith.addf %2, %4 : vector<8x128xf32>
    %c0_5 = arith.constant 0 : index
    %c0_6 = arith.constant 0 : index
    %6 = vector.load %arg4[%c0_5, %c0_6] : memref<8x128xf32, #tpu.memory_space<vmem>>, vector<8x128xf32>
    tpu.vector_store %arg4[%c0_5, %c0_6], %5 {strides = array<i32>} : memref<8x128xf32, #tpu.memory_space<vmem>>, vector<8x128xf32>,
    return
  }
  func.func @transform_0(%arg0: i32) -> (i32, i32) {
    %c0_i32 = arith.constant 0 : i32
    %c0_i32_0 = arith.constant 0 : i32
    return %arg0, %c0_i32 : i32, i32
  }
  func.func @transform_1(%arg0: i32) -> (i32, i32) {
    %c0_i32 = arith.constant 0 : i32
    %c0_i32_0 = arith.constant 0 : i32
    %c0_i32_1 = arith.constant 0 : i32
    return %c0_i32, %c0_i32_0 : i32, i32
  }
  func.func @transform_2(%arg0: i32) -> (i32, i32) {
    %c0_i32 = arith.constant 0 : i32
    %c0_i32_0 = arith.constant 0 : i32
    %c0_i32_1 = arith.constant 0 : i32
    return %c0_i32, %c0_i32_0 : i32, i32
  }
  func.func @transform_3(%arg0: i32) -> (i32, i32) {
    %c0_i32 = arith.constant 0 : i32
    %c0_i32_0 = arith.constant 0 : i32
    return %arg0, %c0_i32 : i32, i32
  }
}

</mosaic_0001>

<bundles_post_ra>
// kernel: discriminator_forward.8
= control target key start
LH: loop header
LB: loop body
LE: loop exit
PB: predicated region body
PF: predicated region fallthrough
CT: control target
= control target key end

     0   :  { %s903_s12 = smov 0   ;;  %s1037_s0 = inlined_call_operand.vmem [shape: bf16[512,128], index: 0, kind: input, shape index: {}]   ;;  %s1038_s1 = inlined_call_operand.vmem [shape: bf16[128,128], index: 1, kind: input, shape index: {}]   ;;  %s1039_s2 = inlined_call_operand.vmem [shape: f32[1,128], index: 2, kind: input, shape index: {}]   ;;  %s1040_s3 = inlined_call_operand.vmem [shape: f32[512,128], index: 3, kind: output, shape index: {}]  }
   0x1 LB: > { %s719_s13 = sadd.s32 4294967295, %s881_s12   ;;  %p723_p0 = scmp.ge.s32.totalorder %s881_s12, 1  ;;  %s881_s12 = sphi %s903_s12, %s13_s12  }
   0x2   : > { %p138_p1 = scmp.lt.s32.totalorder %s881_s12, 3 }
   0x4   : > { %p139_p2 = pnand %p723_p0, %p138_p1 }
   0x5   : > { %v851_v0 = vld [vmem:[%s1038_s1] sm:$0xff] (!%p139_p2)   ;;  %s724_s16 = sshll.u32 (!%p139_p2), %s719_s13, 5  ;;  %v852_v1 = vld [vmem:[%s1038_s1 + $0x8] sm:$0xff] (!%p139_p2)   ;;  %v853_v2 = vld [vmem:[%s1038_s1 + $0x10] sm:$0xff] (!%p139_p2)  }
   0x6   : > { %142 = sbr.rel (%p139_p2) target bundleno = 287 (0x11f), region = 32  ;;  %p163_p3 = scmp.lt.s32.totalorder (!%p139_p2), %s724_s16, 63  ;;  %779 = vmatprep.subr.bf16.mxu0 (!%p139_p2), %v851_v0  ;;  %827 = vmatprep.subr.bf16.mxu1 (!%p139_p2), %v851_v0  ;;  %v854_v3 = vld [vmem:[%s1038_s1 + $0x18] sm:$0xff] (!%p139_p2)   ;;  %v855_v6 = vld [vmem:[%s1038_s1 + $0x20] sm:$0xff] (!%p139_p2)   ;;  %v856_v7 = vld [vmem:[%s1038_s1 + $0x28] sm:$0xff] (!%p139_p2)  }
   0x7   : > { %780 = vmatpush3.bf16.msra.mxu0 (!%p139_p2), %v851_v0  ;;  %835 = vmatpush3.bf16.msra.mxu1 (!%p139_p2), %v851_v0  ;;  %v857_v8 = vld [vmem:[%s1038_s1 + $0x30] sm:$0xff] (!%p139_p2)   ;;  %v858_v9 = vld [vmem:[%s1038_s1 + $0x38] sm:$0xff] (!%p139_p2)   ;;  %v962_v24 = vld [vmem:[%s1039_s2] ss:$0 sm:$0xff] (!%p139_p2) }
   0x8   : > { %781 = vmatprep.subr.bf16.mxu0 (!%p139_p2), %v852_v1  ;;  %828 = vmatprep.subr.bf16.mxu1 (!%p139_p2), %v852_v1 }
   0xb   : > { %782 = vmatpush3.bf16.msra.mxu0 (!%p139_p2), %v852_v1  ;;  %836 = vmatpush3.bf16.msra.mxu1 (!%p139_p2), %v852_v1 }
   0xc   : > { %783 = vmatprep.subr.bf16.mxu0 (!%p139_p2), %v853_v2  ;;  %829 = vmatprep.subr.bf16.mxu1 (!%p139_p2), %v853_v2 }
   0xd   : > { %s1042_s16 = smov (!%p163_p3, %s724_s16), 63 }
   0xe   : > { %s725_s21 = sshll.u32 %s1042_s16, 2  ;;  %s727_s10 = sshll.u32 %s1042_s16, 3 }
   0xf   : > { %s926_s24 = scalar_lea.vmem %s1037_s0, %s725_s21  ;;  %784 = vmatpush3.bf16.msra.mxu0 %v853_v2  ;;  %837 = vmatpush3.bf16.msra.mxu1 %v853_v2  ;;  %s972_s14 = scalar_lea.vmem %s1040_s3, %s727_s10 }
  0x10   : > { %v859_v4 = vld [vmem:[%s926_s24] sm:$0xff]   ;;  %785 = vmatprep.subr.bf16.mxu0 %v854_v3  ;;  %830 = vmatprep.subr.bf16.mxu1 %v854_v3  ;;  %v861_v10 = vld [vmem:[%s926_s24 + $0x8] sm:$0xff]   ;;  %v863_v12 = vld [vmem:[%s926_s24 + $0x10] sm:$0xff]  }
  0x11   : > { %v860_v5 = vld [vmem:[%s926_s24 + $0x40] sm:$0xff]   ;;  %795 = vmatprep.mubr.bf16.mxu0 %v859_v4  ;;  %v862_v11 = vld [vmem:[%s926_s24 + $0x48] sm:$0xff]   ;;  %v864_v13 = vld [vmem:[%s926_s24 + $0x50] sm:$0xff]  }
  0x12   : > { %811 = vmatprep.mubr.bf16.mxu1 %v860_v5  ;;  %v865_v14 = vld [vmem:[%s926_s24 + $0x18] sm:$0xff]   ;;  %v867_v16 = vld [vmem:[%s926_s24 + $0x20] sm:$0xff]   ;;  %v869_v18 = vld [vmem:[%s926_s24 + $0x28] sm:$0xff]  }
  0x13   : > { %786 = vmatpush3.bf16.msra.mxu0 %v854_v3  ;;  %838 = vmatpush3.bf16.msra.mxu1 %v854_v3  ;;  %v866_v15 = vld [vmem:[%s926_s24 + $0x58] sm:$0xff]   ;;  %v868_v17 = vld [vmem:[%s926_s24 + $0x60] sm:$0xff]   ;;  %v870_v19 = vld [vmem:[%s926_s24 + $0x68] sm:$0xff]  }
  0x14   : > { %787 = vmatprep.subr.bf16.mxu0 %v855_v6  ;;  %831 = vmatprep.subr.bf16.mxu1 %v855_v6  ;;  %v871_v20 = vld [vmem:[%s926_s24 + $0x30] sm:$0xff]   ;;  %v873_v22 = vld [vmem:[%s926_s24 + $0x38] sm:$0xff]  }
  0x15   : > { %v872_v21 = vld [vmem:[%s926_s24 + $0x70] sm:$0xff]   ;;  %v874_v23 = vld [vmem:[%s926_s24 + $0x78] sm:$0xff]  }
  0x17   : > { %788 = vmatpush3.bf16.msra.mxu0 %v855_v6  ;;  %839 = vmatpush3.bf16.msra.mxu1 %v855_v6 }
  0x18   : > { %789 = vmatprep.subr.bf16.mxu0 %v856_v7  ;;  %832 = vmatprep.subr.bf16.mxu1 %v856_v7 }
  0x1b   : > { %790 = vmatpush3.bf16.msra.mxu0 %v856_v7  ;;  %840 = vmatpush3.bf16.msra.mxu1 %v856_v7 }
  0x1c   : > { %791 = vmatprep.subr.bf16.mxu0 %v857_v8  ;;  %833 = vmatprep.subr.bf16.mxu1 %v857_v8 }
  0x1f   : > { %792 = vmatpush3.bf16.msra.mxu0 %v857_v8  ;;  %841 = vmatpush3.bf16.msra.mxu1 %v857_v8 }
  0x20   : > { %793 = vmatprep.subr.bf16.mxu0 %v858_v9  ;;  %834 = vmatprep.subr.bf16.mxu1 %v858_v9 }
  0x23   : > { %794 = vmatpush3.bf16.msra.mxu0 %v858_v9  ;;  %842 = vmatpush3.bf16.msra.mxu1 %v858_v9 }
  0x26   : > { %796 = vmatmul.mubr.bf16.vlgmr.msra.gmra.mrb[0].mxu0 %v861_v10  ;;  %812 = vmatmul.mubr.bf16.vlgmr.msra.gmra.mrb[0].mxu1 %v862_v11 }
  0x27   : > { %799 = vmatprep.mubr.bf16.mxu0 %v863_v12  ;;  %815 = vmatprep.mubr.bf16.mxu1 %v864_v13 }
  0x2e   : > { %800 = vmatmul.mubr.bf16.gmra.mrb[4].mxu0 %v865_v14  ;;  %816 = vmatmul.mubr.bf16.gmra.mrb[4].mxu1 %v866_v15 }
  0x2f   : > { %803 = vmatprep.mubr.bf16.mxu0 %v867_v16  ;;  %819 = vmatprep.mubr.bf16.mxu1 %v868_v17 }
  0x36   : > { %804 = vmatmul.mubr.bf16.gmra.mrb[8].mxu0 %v869_v18  ;;  %820 = vmatmul.mubr.bf16.gmra.mrb[8].mxu1 %v870_v19 }
  0x37   : > { %807 = vmatprep.mubr.bf16.mxu0 %v871_v20  ;;  %823 = vmatprep.mubr.bf16.mxu1 %v872_v21 }
  0x3e   : > { %808 = vmatmul.mubr.bf16.gmra.mrb[12].mxu0 %v873_v22  ;;  %824 = vmatmul.mubr.bf16.gmra.mrb[12].mxu1 %v874_v23 }
  0xf9   : > { %v797_v25 = vpop.f32.mrb[0].mxu0  ;;  %v813_v26 = vpop.f32.mrb[0].mxu1 }
  0xfa   : > { %v417_v27 = vadd.f32 %v797_v25, %v962_v24  ;;  %v481_v28 = vadd.f32 %v813_v26, %v962_v24  ;;  %v408_v29 = vpop.f32.mrb[1].mxu0  ;;  %v472_v30 = vpop.f32.mrb[1].mxu1 }
  0xfb   : > { %v409_v31 = vadd.f32 %v962_v24, %v408_v29  ;;  %v473_v32 = vadd.f32 %v962_v24, %v472_v30  ;;  %v798_v33 = vpop.f32.mrb[2].mxu0  ;;  %v814_v34 = vpop.f32.mrb[2].mxu1 }
  0xfc   : > { %vm537_vm0 = vcmp.gt.f32.partialorder %v417_v27, 0.0  ;;  %v569_v35 = vmul.f32 0.2, %v417_v27  ;;  %vm553_vm1 = vcmp.gt.f32.partialorder %v481_v28, 0.0  ;;  %v585_v36 = vmul.f32 0.2, %v481_v28 }
  0xfd   : > { %vm535_vm2 = vcmp.gt.f32.partialorder %v409_v31, 0.0  ;;  %v567_v37 = vmul.f32 0.2, %v409_v31  ;;  %vm551_vm3 = vcmp.gt.f32.partialorder %v473_v32, 0.0  ;;  %v583_v38 = vmul.f32 0.2, %v473_v32 }
  0xfe   : > { %v601_v39 = vsel %vm537_vm0, %v417_v27, %v569_v35  ;;  %v617_v40 = vsel %vm553_vm1, %v481_v28, %v585_v36  ;;  %v420_v41 = vadd.f32 %v798_v33, %v962_v24  ;;  %v484_v42 = vadd.f32 %v814_v34, %v962_v24  ;;  %v411_v43 = vpop.f32.mrb[3].mxu0  ;;  %v475_v44 = vpop.f32.mrb[3].mxu1 }
  0xff   : > { %633 = vst [vmem:[%s972_s14 + $0x10] sm:$0xff] %v601_v39  ;;  %649 = vst [vmem:[%s972_s14 + $0x90] sm:$0xff] %v617_v40  ;;  %v599_v45 = vsel %vm535_vm2, %v409_v31, %v567_v37  ;;  %v615_v46 = vsel %vm551_vm3, %v473_v32, %v583_v38  ;;  %v412_v47 = vadd.f32 %v962_v24, %v411_v43 }
 0x100   : > { %v476_v48 = vadd.f32 %v962_v24, %v475_v44  ;;  %631 = vst [vmem:[%s972_s14] sm:$0xff] %v599_v45  ;;  %647 = vst [vmem:[%s972_s14 + $0x80] sm:$0xff] %v615_v46  ;;  %vm538_vm4 = vcmp.gt.f32.partialorder %v420_v41, 0.0  ;;  %v570_v49 = vmul.f32 0.2, %v420_v41  ;;  %vm554_vm5 = vcmp.gt.f32.partialorder %v484_v42, 0.0 }
 0x101   : > { %v586_v50 = vmul.f32 0.2, %v484_v42  ;;  %vm536_vm6 = vcmp.gt.f32.partialorder %v412_v47, 0.0  ;;  %v568_v51 = vmul.f32 0.2, %v412_v47  ;;  %v801_v55 = vpop.f32.mrb[4].mxu0 }
 0x102   : > { %vm552_vm7 = vcmp.gt.f32.partialorder %v476_v48, 0.0  ;;  %v584_v52 = vmul.f32 0.2, %v476_v48  ;;  %v602_v53 = vsel %vm538_vm4, %v420_v41, %v570_v49  ;;  %v817_v56 = vpop.f32.mrb[4].mxu1  ;;  %v433_v59 = vadd.f32 %v801_v55, %v962_v24  ;;  %v424_v61 = vpop.f32.mrb[5].mxu0 }
 0x103   : > { %v618_v54 = vsel %vm554_vm5, %v484_v42, %v586_v50  ;;  %634 = vst [vmem:[%s972_s14 + $0x18] sm:$0xff] %v602_v53  ;;  %v600_v57 = vsel %vm536_vm6, %v412_v47, %v568_v51  ;;  %v497_v60 = vadd.f32 %v817_v56, %v962_v24  ;;  %v488_v62 = vpop.f32.mrb[5].mxu1  ;;  %v425_v63 = vadd.f32 %v962_v24, %v424_v61  ;;  %v802_v1 = vpop.f32.mrb[6].mxu0 }
 0x104   : > { %650 = vst [vmem:[%s972_s14 + $0x98] sm:$0xff] %v618_v54  ;;  %v616_v58 = vsel %vm552_vm7, %v476_v48, %v584_v52  ;;  %632 = vst [vmem:[%s972_s14 + $0x8] sm:$0xff] %v600_v57  ;;  %v489_v0 = vadd.f32 %v962_v24, %v488_v62  ;;  %v818_v2 = vpop.f32.mrb[6].mxu1  ;;  %vm541_vm8 = vcmp.gt.f32.partialorder %v433_v59, 0.0  ;;  %v573_v3 = vmul.f32 0.2, %v433_v59 }
 0x105   : > { %648 = vst [vmem:[%s972_s14 + $0x88] sm:$0xff] %v616_v58  ;;  %vm557_vm9 = vcmp.gt.f32.partialorder %v497_v60, 0.0  ;;  %v589_v4 = vmul.f32 0.2, %v497_v60  ;;  %vm539_vm10 = vcmp.gt.f32.partialorder %v425_v63, 0.0  ;;  %v436_v9 = vadd.f32 %v802_v1, %v962_v24  ;;  %v427_v11 = vpop.f32.mrb[7].mxu0 }
 0x106   : > { %v571_v5 = vmul.f32 0.2, %v425_v63  ;;  %vm555_vm11 = vcmp.gt.f32.partialorder %v489_v0, 0.0  ;;  %v587_v6 = vmul.f32 0.2, %v489_v0  ;;  %v605_v7 = vsel %vm541_vm8, %v433_v59, %v573_v3  ;;  %v491_v12 = vpop.f32.mrb[7].mxu1 }
 0x107   : > { %v621_v8 = vsel %vm557_vm9, %v497_v60, %v589_v4  ;;  %v500_v10 = vadd.f32 %v818_v2, %v962_v24  ;;  %637 = vst [vmem:[%s972_s14 + $0x30] sm:$0xff] %v605_v7  ;;  %v428_v15 = vadd.f32 %v962_v24, %v427_v11  ;;  %v492_v16 = vadd.f32 %v962_v24, %v491_v12 }
 0x108   : > { %653 = vst [vmem:[%s972_s14 + $0xb0] sm:$0xff] %v621_v8  ;;  %v603_v13 = vsel %vm539_vm10, %v425_v63, %v571_v5  ;;  %v619_v14 = vsel %vm555_vm11, %v489_v0, %v587_v6  ;;  %vm542_vm12 = vcmp.gt.f32.partialorder %v436_v9, 0.0  ;;  %v574_v17 = vmul.f32 0.2, %v436_v9 }
 0x109   : > { %635 = vst [vmem:[%s972_s14 + $0x20] sm:$0xff] %v603_v13  ;;  %651 = vst [vmem:[%s972_s14 + $0xa0] sm:$0xff] %v619_v14  ;;  %vm558_vm13 = vcmp.gt.f32.partialorder %v500_v10, 0.0  ;;  %v590_v18 = vmul.f32 0.2, %v500_v10  ;;  %vm540_vm14 = vcmp.gt.f32.partialorder %v428_v15, 0.0 }
 0x10a   : > { %v572_v19 = vmul.f32 0.2, %v428_v15  ;;  %vm556_vm15 = vcmp.gt.f32.partialorder %v492_v16, 0.0  ;;  %v588_v20 = vmul.f32 0.2, %v492_v16  ;;  %v606_v21 = vsel %vm542_vm12, %v436_v9, %v574_v17  ;;  %v805_v23 = vpop.f32.mrb[8].mxu0 }
 0x10b   : > { %v622_v22 = vsel %vm558_vm13, %v500_v10, %v590_v18  ;;  %v821_v25 = vpop.f32.mrb[8].mxu1  ;;  %638 = vst [vmem:[%s972_s14 + $0x38] sm:$0xff] %v606_v21  ;;  %v449_v28 = vadd.f32 %v805_v23, %v962_v24  ;;  %v440_v30 = vpop.f32.mrb[9].mxu0 }
 0x10c   : > { %654 = vst [vmem:[%s972_s14 + $0xb8] sm:$0xff] %v622_v22  ;;  %v604_v26 = vsel %vm540_vm14, %v428_v15, %v572_v19  ;;  %v620_v27 = vsel %vm556_vm15, %v492_v16, %v588_v20  ;;  %v513_v29 = vadd.f32 %v821_v25, %v962_v24  ;;  %v504_v31 = vpop.f32.mrb[9].mxu1  ;;  %v441_v32 = vadd.f32 %v962_v24, %v440_v30  ;;  %v806_v34 = vpop.f32.mrb[10].mxu0 }
 0x10d   : > { %636 = vst [vmem:[%s972_s14 + $0x28] sm:$0xff] %v604_v26  ;;  %652 = vst [vmem:[%s972_s14 + $0xa8] sm:$0xff] %v620_v27  ;;  %v505_v33 = vadd.f32 %v962_v24, %v504_v31  ;;  %v822_v35 = vpop.f32.mrb[10].mxu1  ;;  %vm545_vm0 = vcmp.gt.f32.partialorder %v449_v28, 0.0  ;;  %v577_v36 = vmul.f32 0.2, %v449_v28  ;;  %v452_v42 = vadd.f32 %v806_v34, %v962_v24 }
 0x10e   : > { %vm561_vm1 = vcmp.gt.f32.partialorder %v513_v29, 0.0  ;;  %v593_v37 = vmul.f32 0.2, %v513_v29  ;;  %vm543_vm2 = vcmp.gt.f32.partialorder %v441_v32, 0.0  ;;  %v575_v38 = vmul.f32 0.2, %v441_v32 }
 0x10f   : > { %vm559_vm3 = vcmp.gt.f32.partialorder %v505_v33, 0.0  ;;  %v591_v39 = vmul.f32 0.2, %v505_v33  ;;  %v609_v40 = vsel %vm545_vm0, %v449_v28, %v577_v36  ;;  %v516_v43 = vadd.f32 %v822_v35, %v962_v24  ;;  %v443_v44 = vpop.f32.mrb[11].mxu0  ;;  %v507_v45 = vpop.f32.mrb[11].mxu1 }
 0x110   : > { %v625_v41 = vsel %vm561_vm1, %v513_v29, %v593_v37  ;;  %641 = vst [vmem:[%s972_s14 + $0x50] sm:$0xff] %v609_v40  ;;  %v607_v46 = vsel %vm543_vm2, %v441_v32, %v575_v38  ;;  %v444_v48 = vadd.f32 %v962_v24, %v443_v44  ;;  %v508_v49 = vadd.f32 %v962_v24, %v507_v45 }
 0x111   : > { %657 = vst [vmem:[%s972_s14 + $0xd0] sm:$0xff] %v625_v41  ;;  %v623_v47 = vsel %vm559_vm3, %v505_v33, %v591_v39  ;;  %v809_v50 = vpop.f32.mrb[12].mxu0  ;;  %v825_v51 = vpop.f32.mrb[12].mxu1  ;;  %639 = vst [vmem:[%s972_s14 + $0x40] sm:$0xff] %v607_v46  ;;  %vm546_vm4 = vcmp.gt.f32.partialorder %v452_v42, 0.0  ;;  %vm562_vm5 = vcmp.gt.f32.partialorder %v516_v43, 0.0 }
 0x112   : > { %655 = vst [vmem:[%s972_s14 + $0xc0] sm:$0xff] %v623_v47  ;;  %v578_v52 = vmul.f32 0.2, %v452_v42  ;;  %v594_v53 = vmul.f32 0.2, %v516_v43  ;;  %vm544_vm6 = vcmp.gt.f32.partialorder %v444_v48, 0.0  ;;  %v465_v58 = vadd.f32 %v809_v50, %v962_v24 }
 0x113   : > { %v576_v54 = vmul.f32 0.2, %v444_v48  ;;  %vm560_vm7 = vcmp.gt.f32.partialorder %v508_v49, 0.0  ;;  %v592_v55 = vmul.f32 0.2, %v508_v49  ;;  %v529_v59 = vadd.f32 %v825_v51, %v962_v24  ;;  %v456_v60 = vpop.f32.mrb[13].mxu0 }
 0x114   : > { %v610_v56 = vsel %vm546_vm4, %v452_v42, %v578_v52  ;;  %v626_v57 = vsel %vm562_vm5, %v516_v43, %v594_v53  ;;  %v520_v61 = vpop.f32.mrb[13].mxu1  ;;  %v457_v0 = vadd.f32 %v962_v24, %v456_v60  ;;  %v810_v2 = vpop.f32.mrb[14].mxu0  ;;  %vm549_vm8 = vcmp.gt.f32.partialorder %v465_v58, 0.0 }
 0x115   : > { %642 = vst [vmem:[%s972_s14 + $0x58] sm:$0xff] %v610_v56  ;;  %658 = vst [vmem:[%s972_s14 + $0xd8] sm:$0xff] %v626_v57  ;;  %v608_v62 = vsel %vm544_vm6, %v444_v48, %v576_v54  ;;  %v624_v63 = vsel %vm560_vm7, %v508_v49, %v592_v55  ;;  %v521_v1 = vadd.f32 %v962_v24, %v520_v61  ;;  %v826_v3 = vpop.f32.mrb[14].mxu1  ;;  %v581_v4 = vmul.f32 0.2, %v465_v58  ;;  %v459_v12 = vpop.f32.mrb[15].mxu0 }
 0x116   : > { %640 = vst [vmem:[%s972_s14 + $0x48] sm:$0xff] %v608_v62  ;;  %656 = vst [vmem:[%s972_s14 + $0xc8] sm:$0xff] %v624_v63  ;;  %vm565_vm9 = vcmp.gt.f32.partialorder %v529_v59, 0.0  ;;  %v597_v5 = vmul.f32 0.2, %v529_v59  ;;  %vm547_vm10 = vcmp.gt.f32.partialorder %v457_v0, 0.0  ;;  %v468_v10 = vadd.f32 %v810_v2, %v962_v24 }
 0x117   : > { %v579_v6 = vmul.f32 0.2, %v457_v0  ;;  %vm563_vm11 = vcmp.gt.f32.partialorder %v521_v1, 0.0  ;;  %v595_v7 = vmul.f32 0.2, %v521_v1  ;;  %v613_v8 = vsel %vm549_vm8, %v465_v58, %v581_v4  ;;  %v523_v13 = vpop.f32.mrb[15].mxu1 }
 0x118   : > { %v629_v9 = vsel %vm565_vm9, %v529_v59, %v597_v5  ;;  %v532_v11 = vadd.f32 %v826_v3, %v962_v24  ;;  %645 = vst [vmem:[%s972_s14 + $0x70] sm:$0xff] %v613_v8  ;;  %v460_v16 = vadd.f32 %v962_v24, %v459_v12  ;;  %v524_v17 = vadd.f32 %v962_v24, %v523_v13 }
 0x119   : > { %661 = vst [vmem:[%s972_s14 + $0xf0] sm:$0xff] %v629_v9  ;;  %v611_v14 = vsel %vm547_vm10, %v457_v0, %v579_v6  ;;  %v627_v15 = vsel %vm563_vm11, %v521_v1, %v595_v7  ;;  %vm550_vm12 = vcmp.gt.f32.partialorder %v468_v10, 0.0  ;;  %v582_v18 = vmul.f32 0.2, %v468_v10 }
 0x11a   : > { %643 = vst [vmem:[%s972_s14 + $0x60] sm:$0xff] %v611_v14  ;;  %659 = vst [vmem:[%s972_s14 + $0xe0] sm:$0xff] %v627_v15  ;;  %vm566_vm13 = vcmp.gt.f32.partialorder %v532_v11, 0.0  ;;  %v598_v19 = vmul.f32 0.2, %v532_v11  ;;  %vm548_vm14 = vcmp.gt.f32.partialorder %v460_v16, 0.0 }
 0x11b   : > { %v580_v20 = vmul.f32 0.2, %v460_v16  ;;  %vm564_vm15 = vcmp.gt.f32.partialorder %v524_v17, 0.0  ;;  %v596_v21 = vmul.f32 0.2, %v524_v17  ;;  %v614_v22 = vsel %vm550_vm12, %v468_v10, %v582_v18 }
 0x11c   : > { %v630_v23 = vsel %vm566_vm13, %v532_v11, %v598_v19  ;;  %646 = vst [vmem:[%s972_s14 + $0x78] sm:$0xff] %v614_v22 }
 0x11d   : > { %662 = vst [vmem:[%s972_s14 + $0xf8] sm:$0xff] %v630_v23  ;;  %v612_v25 = vsel %vm548_vm14, %v460_v16, %v580_v20  ;;  %v628_v26 = vsel %vm564_vm15, %v524_v17, %v596_v21 }
 0x11e   : > { %644 = vst [vmem:[%s972_s14 + $0x68] sm:$0xff] %v612_v25  ;;  %660 = vst [vmem:[%s972_s14 + $0xe8] sm:$0xff] %v628_v26 }
 0x11f PF: > { %s13_s12 = sadd.s32 1, %s881_s12  }
 0x120   : > { %p10_p4 = scmp.ge.s32.totalorder %s13_s12, 4  }
 0x122   :  { %12 = sbr.rel (!%p10_p4) target bundleno = 1 (0x1), region = 62 }

// kernel: discriminator_forward.9
= control target key start
LH: loop header
LB: loop body
LE: loop exit
PB: predicated region body
PF: predicated region fallthrough
CT: control target
= control target key end

     0   :  { %s778_s15 = smov 0   ;;  %s780_s16 = smov 0   ;;  %s853_s0 = inlined_call_operand.vmem [shape: bf16[2,64,128], index: 0, kind: input, shape index: {}]   ;;  %s854_s1 = inlined_call_operand.vmem [shape: bf16[128,128], index: 1, kind: input, shape index: {}]   ;;  %s855_s2 = inlined_call_operand.vmem [shape: f32[2,64,128], index: 2, kind: output, shape index: {0}]   ;;  %s856_s3 = inlined_call_operand.vmem [shape: f32[2,1,128], index: 3, kind: output, shape index: {1}]   ;;  %s857_s4 = inlined_call_operand.vmem [shape: f32[2,1,128], index: 4, kind: output, shape index: {2}]  }
   0x1   :  { %s782_s17 = smov 0  }
   0x2 LB: > { %s27_s18 = sadd.s32 1, %s746_s16  ;;  %p618_p0 = scmp.ge.s32.totalorder %s750_s17, 1  ;;  %s750_s17 = sphi %s782_s17, %s15_s17   ;;  %s746_s16 = sphi %s780_s16, %s859_s16   ;;  %s742_s15 = sphi %s778_s15, %s858_s15  }
   0x3   : > { %p29_p1 = scmp.ge.s32.totalorder %s27_s18, 2  ;;  %p188_p2 = scmp.lt.s32.totalorder %s750_s17, 3 }
   0x5   : > { %s861_s18 = smov (%p29_p1, %s27_s18), 0  ;;  %p189_p3 = pnand %p618_p0, %p188_p2 }
   0x6   : > { %v716_v0 = vld [vmem:[%s854_s1] sm:$0xff] (!%p189_p3)   ;;  %p229_p4 = scmp.lt.s32.totalorder (!%p189_p3), %s742_s15, 1  ;;  %v717_v1 = vld [vmem:[%s854_s1 + $0x8] sm:$0xff] (!%p189_p3)   ;;  %v718_v2 = vld [vmem:[%s854_s1 + $0x10] sm:$0xff] (!%p189_p3)   ;;  %v752_v12 = vmov (!%p189_p3), 0.0  }
   0x7   : > { %192 = sbr.rel (%p189_p3) target bundleno = 293 (0x125), region = 28  ;;  %651 = vmatprep.subr.bf16.mxu0 (!%p189_p3), %v716_v0  ;;  %675 = vmatprep.subr.bf16.mxu1 (!%p189_p3), %v716_v0  ;;  %v719_v3 = vld [vmem:[%s854_s1 + $0x18] sm:$0xff] (!%p189_p3)   ;;  %v720_v6 = vld [vmem:[%s854_s1 + $0x20] sm:$0xff] (!%p189_p3)   ;;  %v721_v7 = vld [vmem:[%s854_s1 + $0x28] sm:$0xff] (!%p189_p3)   ;;  %259 = vst [vmem:[#allocation2] sm:$0x1] (!%p189_p3), %v752_v12 }
   0x8   : > { %652 = vmatpush3.bf16.msra.mxu0 (!%p189_p3), %v716_v0  ;;  %683 = vmatpush3.bf16.msra.mxu1 (!%p189_p3), %v716_v0  ;;  %v722_v8 = vld [vmem:[%s854_s1 + $0x30] sm:$0xff] (!%p189_p3)   ;;  %v723_v9 = vld [vmem:[%s854_s1 + $0x38] sm:$0xff] (!%p189_p3)   ;;  %260 = vst [vmem:[#allocation3] sm:$0x1] (!%p189_p3), %v752_v12 }
   0x9   : > { %653 = vmatprep.subr.bf16.mxu0 (!%p189_p3), %v717_v1  ;;  %676 = vmatprep.subr.bf16.mxu1 (!%p189_p3), %v717_v1 }
   0xc   : > { %654 = vmatpush3.bf16.msra.mxu0 (!%p189_p3), %v717_v1  ;;  %684 = vmatpush3.bf16.msra.mxu1 (!%p189_p3), %v717_v1 }
   0xd   : > { %655 = vmatprep.subr.bf16.mxu0 (!%p189_p3), %v718_v2  ;;  %677 = vmatprep.subr.bf16.mxu1 (!%p189_p3), %v718_v2 }
   0xe   : > { %s863_s15 = smov (!%p229_p4, %s742_s15), 1  ;;  %v430_v52 = vld [vmem:[#allocation2] sm:$0x1] }
   0xf   : > { %s637_s25 = sshll.u32 %s863_s15, 5  ;;  %s638_s13 = sshll.u32 %s863_s15, 6  ;;  %v446_v55 = vld [vmem:[#allocation3] sm:$0x1] }
  0x10   : > { %s811_s28 = scalar_lea.vmem %s853_s0, %s637_s25  ;;  %656 = vmatpush3.bf16.msra.mxu0 %v718_v2  ;;  %685 = vmatpush3.bf16.msra.mxu1 %v718_v2  ;;  %s246_s20 = scalar_lea.vmem %s855_s2, %s638_s13 }
  0x11   : > { %v724_v4 = vld [vmem:[%s811_s28] sm:$0xff]   ;;  %v726_v5 = vld [vmem:[%s811_s28 + $0x10] sm:$0xff]   ;;  %657 = vmatprep.subr.bf16.mxu0 %v719_v3  ;;  %678 = vmatprep.subr.bf16.mxu1 %v719_v3  ;;  %v725_v10 = vld [vmem:[%s811_s28 + $0x8] sm:$0xff]   ;;  %s250_s23 = scalar_lea.vmem %s856_s3, %s863_s15  ;;  %s253_s26 = scalar_lea.vmem %s857_s4, %s863_s15 }
  0x12   : > { %667 = vmatprep.mubr.bf16.mxu0 %v724_v4  ;;  %671 = vmatprep.mubr.bf16.mxu1 %v726_v5  ;;  %v727_v11 = vld [vmem:[%s811_s28 + $0x18] sm:$0xff]  }
  0x14   : > { %658 = vmatpush3.bf16.msra.mxu0 %v719_v3  ;;  %686 = vmatpush3.bf16.msra.mxu1 %v719_v3 }
  0x15   : > { %659 = vmatprep.subr.bf16.mxu0 %v720_v6  ;;  %679 = vmatprep.subr.bf16.mxu1 %v720_v6 }
  0x18   : > { %660 = vmatpush3.bf16.msra.mxu0 %v720_v6  ;;  %687 = vmatpush3.bf16.msra.mxu1 %v720_v6 }
  0x19   : > { %661 = vmatprep.subr.bf16.mxu0 %v721_v7  ;;  %680 = vmatprep.subr.bf16.mxu1 %v721_v7 }
  0x1c   : > { %662 = vmatpush3.bf16.msra.mxu0 %v721_v7  ;;  %688 = vmatpush3.bf16.msra.mxu1 %v721_v7 }
  0x1d   : > { %663 = vmatprep.subr.bf16.mxu0 %v722_v8  ;;  %681 = vmatprep.subr.bf16.mxu1 %v722_v8 }
  0x20   : > { %664 = vmatpush3.bf16.msra.mxu0 %v722_v8  ;;  %689 = vmatpush3.bf16.msra.mxu1 %v722_v8 }
  0x21   : > { %665 = vmatprep.subr.bf16.mxu0 %v723_v9  ;;  %682 = vmatprep.subr.bf16.mxu1 %v723_v9 }
  0x24   : > { %666 = vmatpush3.bf16.msra.mxu0 %v723_v9  ;;  %690 = vmatpush3.bf16.msra.mxu1 %v723_v9 }
  0x27   : > { %668 = vmatmul.mubr.bf16.vlgmr.msra.gmra.mrb[0].mxu0 %v725_v10  ;;  %672 = vmatmul.mubr.bf16.vlgmr.msra.gmra.mrb[0].mxu1 %v727_v11 }
  0xfa   : > { %v669_v13 = vpop.f32.mrb[0].mxu0  ;;  %v673_v14 = vpop.f32.mrb[0].mxu1 }
  0xfb   : > { %424 = vst [vmem:[%s246_s20 + $0x10] sm:$0xff] %v669_v13  ;;  %v391_v15 = vpop.f32.mrb[1].mxu0  ;;  %428 = vst [vmem:[%s246_s20 + $0x30] sm:$0xff] %v673_v14  ;;  %v407_v16 = vpop.f32.mrb[1].mxu1  ;;  %v449_v24 = vmul.f32 %v669_v13, %v669_v13  ;;  %v453_v36 = vmul.f32 %v673_v14, %v673_v14 }
  0xfc   : > { %422 = vst [vmem:[%s246_s20] sm:$0xff] %v391_v15  ;;  %v670_v17 = vpop.f32.mrb[2].mxu0  ;;  %426 = vst [vmem:[%s246_s20 + $0x20] sm:$0xff] %v407_v16  ;;  %v674_v18 = vpop.f32.mrb[2].mxu1  ;;  %v447_v21 = vmul.f32 %v391_v15, %v391_v15  ;;  %v451_v30 = vmul.f32 %v407_v16, %v407_v16 }
  0xfd   : > { %425 = vst [vmem:[%s246_s20 + $0x18] sm:$0xff] %v670_v17  ;;  %v394_v19 = vpop.f32.mrb[3].mxu0  ;;  %429 = vst [vmem:[%s246_s20 + $0x38] sm:$0xff] %v674_v18  ;;  %v410_v20 = vpop.f32.mrb[3].mxu1  ;;  %v450_v27 = vmul.f32 %v670_v17, %v670_v17  ;;  %v454_v39 = vmul.f32 %v674_v18, %v674_v18 }
  0xfe   : > { %423 = vst [vmem:[%s246_s20 + $0x8] sm:$0xff] %v394_v19  ;;  %v431_v22 = vadd.f32 %v394_v19, %v391_v15  ;;  %v448_v23 = vmul.f32 %v394_v19, %v394_v19  ;;  %427 = vst [vmem:[%s246_s20 + $0x28] sm:$0xff] %v410_v20  ;;  %v452_v35 = vmul.f32 %v410_v20, %v410_v20 }
 0x100   : > { %v432_v25 = vadd.f32 %v669_v13, %v431_v22  ;;  %v455_v26 = vadd.f32 %v448_v23, %v447_v21 }
 0x102   : > { %v456_v28 = vadd.f32 %v455_v26, %v449_v24  ;;  %v433_v29 = vadd.f32 %v670_v17, %v432_v25 }
 0x104   : > { %v434_v31 = vadd.f32 %v433_v29, %v407_v16  ;;  %v457_v32 = vadd.f32 %v456_v28, %v450_v27 }
 0x106   : > { %v458_v33 = vadd.f32 %v457_v32, %v451_v30  ;;  %v435_v34 = vadd.f32 %v434_v31, %v410_v20 }
 0x108   : > { %v436_v37 = vadd.f32 %v673_v14, %v435_v34  ;;  %v459_v38 = vadd.f32 %v458_v33, %v452_v35 }
 0x10a   : > { %v437_v40 = vadd.f32 %v674_v18, %v436_v37  ;;  %v460_v41 = vadd.f32 %v459_v38, %v453_v36 }
 0x10c   : > { %v438_v42 = vrot.slane %v437_v40, 4  ;;  %v461_v43 = vadd.f32 %v460_v41, %v454_v39 }
 0x10e   : > { %v439_v44 = vadd.f32 %v438_v42, %v437_v40  ;;  %v462_v45 = vrot.slane %v461_v43, 4 }
 0x110   : > { %v440_v46 = vrot.slane %v439_v44, 2  ;;  %v463_v47 = vadd.f32 %v462_v45, %v461_v43 }
 0x112   : > { %v441_v48 = vadd.f32 %v440_v46, %v439_v44  ;;  %v464_v49 = vrot.slane %v463_v47, 2 }
 0x114   : > { %v442_v50 = vrot.slane %v441_v48, 1  ;;  %v465_v51 = vadd.f32 %v464_v49, %v463_v47 }
 0x116   : > { %v443_v53 = vadd.f32 %v442_v50, %v441_v48  ;;  %v466_v54 = vrot.slane %v465_v51, 1 }
 0x118   : > { %v444_v56 = vadd.f32 %v443_v53, %v430_v52  ;;  %v467_v57 = vadd.f32 %v466_v54, %v465_v51 }
 0x11a   : > { %445 = vst [vmem:[#allocation2] sm:$0x1] %v444_v56  ;;  %v468_v58 = vadd.f32 %v467_v57, %v446_v55 }
 0x11c   : > { %469 = vst [vmem:[#allocation3] sm:$0x1] %v468_v58 }
 0x121   : > { %v473_v59 = vld [vmem:[#allocation2] sm:$0x1] }
 0x122   : > { %474 = vst [vmem:[%s250_s23] sm:$0x1] %v473_v59 }
 0x123   : > { %v475_v60 = vld [vmem:[#allocation3] sm:$0x1] }
 0x124   : > { %476 = vst [vmem:[%s253_s26] sm:$0x1] %v475_v60 }
 0x125 PF: > { %s15_s17 = sadd.s32 1, %s750_s17   ;;  %s858_s15 = smov %s746_s16 }
 0x126   : > { %p12_p5 = scmp.ge.s32.totalorder %s15_s17, 4   ;;  %s859_s16 = smov %s861_s18 }
 0x128   :  { %14 = sbr.rel (!%p12_p5) target bundleno = 2 (0x2), region = 90 }

// kernel: discriminator_forward.10
= control target key start
LH: loop header
LB: loop body
LE: loop exit
PB: predicated region body
PF: predicated region fallthrough
CT: control target
= control target key end

     0   :  { %s572_s18 = smov 0   ;;  %s574_s19 = smov 0   ;;  %s636_s0 = inlined_call_operand.vmem [shape: f32[2,64,128], index: 0, kind: input, shape index: {}]   ;;  %s637_s1 = inlined_call_operand.vmem [shape: f32[2,1,128], index: 1, kind: input, shape index: {}]   ;;  %s638_s2 = inlined_call_operand.vmem [shape: f32[2,1,128], index: 2, kind: input, shape index: {}]   ;;  %s639_s3 = inlined_call_operand.vmem [shape: f32[1,128], index: 3, kind: input, shape index: {}]   ;;  %s640_s4 = inlined_call_operand.vmem [shape: f32[1,128], index: 4, kind: input, shape index: {}]   ;;  %s641_s5 = inlined_call_operand.vmem [shape: f32[2,64,128], index: 5, kind: output, shape index: {}]  }
   0x1   :  { %s576_s20 = smov 0  }
   0x2 LB: > { %s27_s21 = sadd.s32 1, %s536_s19  ;;  %p483_p0 = scmp.ge.s32.totalorder %s540_s20, 1  ;;  %s540_s20 = sphi %s576_s20, %s15_s20   ;;  %s536_s19 = sphi %s574_s19, %s643_s19   ;;  %s532_s18 = sphi %s572_s18, %s642_s18  }
   0x3   : > { %p29_p1 = scmp.ge.s32.totalorder %s27_s21, 2  ;;  %p224_p2 = scmp.lt.s32.totalorder %s540_s20, 3 }
   0x5   : > { %s645_s21 = smov (%p29_p1, %s27_s21), 0  ;;  %p225_p3 = pnand %p483_p0, %p224_p2 }
   0x6   : > { %p267_p4 = scmp.lt.s32.totalorder (!%p225_p3), %s532_s18, 1  ;;  %v315_v8 = vlaneseq (!%p225_p3)  ;;  %v299_v10 = vld [vmem:[%s639_s3] sm:$0x1] (!%p225_p3) }
   0x7   : > { %228 = sbr.rel (%p225_p3) target bundleno = 57 (0x39), region = 40  ;;  %v303_v14 = vld [vmem:[%s640_s4] sm:$0x1] (!%p225_p3) }
   0x8   : > { %v316_v9 = vshrl.u32 (!%p225_p3), %v315_v8, 7 }
   0xa   : > { %v317_v11 = vsub.s32 (!%p225_p3), 0, %v316_v9 }
   0xe   : > { %s647_s18 = smov (!%p267_p4, %s532_s18), 1 }
   0xf   : > { %s278_s24 = scalar_lea.vmem %s637_s1, %s647_s18  ;;  %s281_s27 = scalar_lea.vmem %s638_s2, %s647_s18 }
  0x10   : > { %v292_v0 = vld [vmem:[%s278_s24] sm:$0x1]  ;;  %s490_s28 = sshll.u32 %s647_s18, 6 }
  0x11   : > { %v293_v1 = vmul.f32 0.015625, %v292_v0  ;;  %v294_v2 = vld [vmem:[%s281_s27] sm:$0x1]  ;;  %s274_s6 = scalar_lea.vmem %s636_s0, %s490_s28  ;;  %s617_s13 = scalar_lea.vmem %s641_s5, %s490_s28 }
  0x12   : > { %v295_v3 = vmul.f32 0.015625, %v294_v2  ;;  %v306_v15 = vld [vmem:[%s274_s6] sm:$0xff]  ;;  %v307_v16 = vld [vmem:[%s274_s6 + $0x8] sm:$0xff]  ;;  %v308_v17 = vld [vmem:[%s274_s6 + $0x10] sm:$0xff] }
  0x13   : > { %v296_v4 = vmul.f32 %v293_v1, %v293_v1  ;;  %v309_v18 = vld [vmem:[%s274_s6 + $0x18] sm:$0xff]  ;;  %v310_v21 = vld [vmem:[%s274_s6 + $0x20] sm:$0xff]  ;;  %v311_v22 = vld [vmem:[%s274_s6 + $0x28] sm:$0xff] }
  0x14   : > { %v312_v23 = vld [vmem:[%s274_s6 + $0x30] sm:$0xff]  ;;  %v313_v24 = vld [vmem:[%s274_s6 + $0x38] sm:$0xff] }
  0x15   : > { %v297_v5 = vsub.f32 %v295_v3, %v296_v4 }
  0x17   : > { %v298_v6 = vmax.f32 %v297_v5, 0.0 }
  0x19   : > { %v300_v7 = vadd.f32 1e-05, %v298_v6 }
  0x1b   : > { %516 = vrsqrt.f32 %v300_v7 }
  0x25   : > { %v517_v12 = vpop.eup %516 }
  0x26   : > { %v302_v13 = vmul.f32 %v517_v12, %v299_v10 }
  0x28   : > { %v304_v19 = vmul.f32 %v302_v13, %v293_v1  ;;  %v318_v20 = vrot.slane %v302_v13, %v317_v11 }
  0x2a   : > { %v305_v25 = vsub.f32 %v303_v14, %v304_v19  ;;  %v320_v26 = vmul.f32 %v318_v20, %v306_v15  ;;  %v321_v27 = vmul.f32 %v318_v20, %v307_v16  ;;  %v322_v28 = vmul.f32 %v318_v20, %v308_v17 }
  0x2b   : > { %v323_v29 = vmul.f32 %v318_v20, %v309_v18  ;;  %v324_v30 = vmul.f32 %v318_v20, %v310_v21  ;;  %v325_v31 = vmul.f32 %v318_v20, %v311_v22  ;;  %v326_v32 = vmul.f32 %v318_v20, %v312_v23 }
  0x2c   : > { %v332_v33 = vrot.slane %v305_v25, %v317_v11  ;;  %v327_v34 = vmul.f32 %v318_v20, %v313_v24 }
  0x2e   : > { %v334_v35 = vadd.f32 %v332_v33, %v320_v26  ;;  %v335_v36 = vadd.f32 %v332_v33, %v321_v27  ;;  %v336_v37 = vadd.f32 %v332_v33, %v322_v28  ;;  %v337_v38 = vadd.f32 %v332_v33, %v323_v29 }
  0x2f   : > { %v338_v39 = vadd.f32 %v332_v33, %v324_v30  ;;  %v339_v40 = vadd.f32 %v332_v33, %v325_v31  ;;  %v340_v41 = vadd.f32 %v332_v33, %v326_v32  ;;  %v341_v42 = vadd.f32 %v332_v33, %v327_v34 }
  0x30   : > { %vm342_vm0 = vcmp.gt.f32.partialorder %v334_v35, 0.0  ;;  %v350_v43 = vmul.f32 0.2, %v334_v35  ;;  %vm343_vm1 = vcmp.gt.f32.partialorder %v335_v36, 0.0  ;;  %v351_v44 = vmul.f32 0.2, %v335_v36 }
  0x31   : > { %vm344_vm2 = vcmp.gt.f32.partialorder %v336_v37, 0.0  ;;  %v352_v45 = vmul.f32 0.2, %v336_v37  ;;  %vm345_vm3 = vcmp.gt.f32.partialorder %v337_v38, 0.0  ;;  %v353_v46 = vmul.f32 0.2, %v337_v38 }
  0x32   : > { %v358_v47 = vsel %vm342_vm0, %v334_v35, %v350_v43  ;;  %v359_v48 = vsel %vm343_vm1, %v335_v36, %v351_v44  ;;  %vm346_vm4 = vcmp.gt.f32.partialorder %v338_v39, 0.0  ;;  %v354_v49 = vmul.f32 0.2, %v338_v39 }
  0x33   : > { %366 = vst [vmem:[%s617_s13] sm:$0xff] %v358_v47  ;;  %367 = vst [vmem:[%s617_s13 + $0x8] sm:$0xff] %v359_v48  ;;  %v360_v50 = vsel %vm344_vm2, %v336_v37, %v352_v45  ;;  %v361_v51 = vsel %vm345_vm3, %v337_v38, %v353_v46  ;;  %vm347_vm5 = vcmp.gt.f32.partialorder %v339_v40, 0.0  ;;  %v355_v52 = vmul.f32 0.2, %v339_v40 }
  0x34   : > { %368 = vst [vmem:[%s617_s13 + $0x10] sm:$0xff] %v360_v50  ;;  %369 = vst [vmem:[%s617_s13 + $0x18] sm:$0xff] %v361_v51  ;;  %v362_v53 = vsel %vm346_vm4, %v338_v39, %v354_v49  ;;  %vm348_vm6 = vcmp.gt.f32.partialorder %v340_v41, 0.0  ;;  %v356_v54 = vmul.f32 0.2, %v340_v41  ;;  %vm349_vm7 = vcmp.gt.f32.partialorder %v341_v42, 0.0 }
  0x35   : > { %370 = vst [vmem:[%s617_s13 + $0x20] sm:$0xff] %v362_v53  ;;  %v363_v55 = vsel %vm347_vm5, %v339_v40, %v355_v52  ;;  %v357_v56 = vmul.f32 0.2, %v341_v42 }
  0x36   : > { %371 = vst [vmem:[%s617_s13 + $0x28] sm:$0xff] %v363_v55  ;;  %v364_v57 = vsel %vm348_vm6, %v340_v41, %v356_v54 }
  0x37   : > { %372 = vst [vmem:[%s617_s13 + $0x30] sm:$0xff] %v364_v57  ;;  %v365_v58 = vsel %vm349_vm7, %v341_v42, %v357_v56 }
  0x38   : > { %373 = vst [vmem:[%s617_s13 + $0x38] sm:$0xff] %v365_v58 }
  0x39 PF: > { %s15_s20 = sadd.s32 1, %s540_s20   ;;  %s642_s18 = smov %s536_s19 }
  0x3a   : > { %p12_p5 = scmp.ge.s32.totalorder %s15_s20, 4   ;;  %s643_s19 = smov %s645_s21 }
  0x3c   :  { %14 = sbr.rel (!%p12_p5) target bundleno = 2 (0x2), region = 76 }

// kernel: discriminator_forward.11
= control target key start
LH: loop header
LB: loop body
LE: loop exit
PB: predicated region body
PF: predicated region fallthrough
CT: control target
= control target key end

     0   :  { %s763_s15 = smov 0   ;;  %s765_s16 = smov 0   ;;  %s855_s0 = inlined_call_operand.vmem [shape: bf16[2,16,256], index: 0, kind: input, shape index: {}]   ;;  %s856_s1 = inlined_call_operand.vmem [shape: bf16[256,128], index: 1, kind: input, shape index: {}]   ;;  %s857_s2 = inlined_call_operand.vmem [shape: f32[2,16,128], index: 2, kind: output, shape index: {0}]   ;;  %s858_s3 = inlined_call_operand.vmem [shape: f32[2,1,128], index: 3, kind: output, shape index: {1}]   ;;  %s859_s4 = inlined_call_operand.vmem [shape: f32[2,1,128], index: 4, kind: output, shape index: {2}]  }
   0x1   :  { %s767_s17 = smov 0  }
   0x2 LB: > { %s27_s18 = sadd.s32 1, %s731_s16  ;;  %p620_p0 = scmp.ge.s32.totalorder %s735_s17, 1  ;;  %s735_s17 = sphi %s767_s17, %s15_s17   ;;  %s731_s16 = sphi %s765_s16, %s861_s16   ;;  %s727_s15 = sphi %s763_s15, %s860_s15  }
   0x3   : > { %p29_p1 = scmp.ge.s32.totalorder %s27_s18, 2  ;;  %p189_p2 = scmp.lt.s32.totalorder %s735_s17, 3 }
   0x5   : > { %s863_s18 = smov (%p29_p1, %s27_s18), 0  ;;  %p190_p3 = pnand %p620_p0, %p189_p2 }
   0x6   : > { %v694_v0 = vld [vmem:[%s856_s1 + $0x40] sm:$0xff] (!%p190_p3)   ;;  %v696_v2 = vld [vmem:[%s856_s1 + $0x48] sm:$0xff] (!%p190_p3)   ;;  %p231_p4 = scmp.lt.s32.totalorder (!%p190_p3), %s727_s15, 1  ;;  %v698_v4 = vld [vmem:[%s856_s1 + $0x50] sm:$0xff] (!%p190_p3)   ;;  %v737_v18 = vmov (!%p190_p3), 0.0  }
   0x7   : > { %193 = sbr.rel (%p190_p3) target bundleno = 283 (0x11b), region = 28  ;;  %v695_v1 = vld [vmem:[%s856_s1] sm:$0xff] (!%p190_p3)   ;;  %647 = vmatprep.subr.bf16.mxu0 (!%p190_p3), %v694_v0  ;;  %v697_v3 = vld [vmem:[%s856_s1 + $0x8] sm:$0xff] (!%p190_p3)   ;;  %v699_v5 = vld [vmem:[%s856_s1 + $0x10] sm:$0xff] (!%p190_p3)   ;;  %262 = vst [vmem:[#allocation2] sm:$0x1] (!%p190_p3), %v737_v18 }
   0x8   : > { %648 = vmatpush3.bf16.msra.mxu0 (!%p190_p3), %v695_v1  ;;  %v700_v6 = vld [vmem:[%s856_s1 + $0x58] sm:$0xff] (!%p190_p3)   ;;  %v702_v8 = vld [vmem:[%s856_s1 + $0x60] sm:$0xff] (!%p190_p3)   ;;  %v704_v10 = vld [vmem:[%s856_s1 + $0x68] sm:$0xff] (!%p190_p3)   ;;  %263 = vst [vmem:[#allocation3] sm:$0x1] (!%p190_p3), %v737_v18 }
   0x9   : > { %649 = vmatprep.subr.bf16.mxu0 (!%p190_p3), %v696_v2  ;;  %v701_v7 = vld [vmem:[%s856_s1 + $0x18] sm:$0xff] (!%p190_p3)   ;;  %v703_v9 = vld [vmem:[%s856_s1 + $0x20] sm:$0xff] (!%p190_p3)   ;;  %v705_v12 = vld [vmem:[%s856_s1 + $0x28] sm:$0xff] (!%p190_p3)  }
   0xa   : > { %v706_v13 = vld [vmem:[%s856_s1 + $0x70] sm:$0xff] (!%p190_p3)   ;;  %v708_v15 = vld [vmem:[%s856_s1 + $0x78] sm:$0xff] (!%p190_p3)  }
   0xb   : > { %v707_v14 = vld [vmem:[%s856_s1 + $0x30] sm:$0xff] (!%p190_p3)   ;;  %v709_v16 = vld [vmem:[%s856_s1 + $0x38] sm:$0xff] (!%p190_p3)  }
   0xc   : > { %650 = vmatpush3.bf16.msra.mxu0 (!%p190_p3), %v697_v3 }
   0xd   : > { %651 = vmatprep.subr.bf16.mxu0 (!%p190_p3), %v698_v4 }
   0xe   : > { %s865_s15 = smov (!%p231_p4, %s727_s15), 1  ;;  %v447_v38 = vld [vmem:[#allocation2] sm:$0x1] }
   0xf   : > { %s645_s9 = sshll.u32 %s865_s15, 4  ;;  %v457_v41 = vld [vmem:[#allocation3] sm:$0x1]  ;;  %s253_s12 = scalar_lea.vmem %s858_s3, %s865_s15 }
  0x10   : > { %652 = vmatpush3.bf16.msra.mxu0 %v699_v5  ;;  %s239_s14 = scalar_lea.vmem %s855_s0, %s645_s9  ;;  %s249_s10 = scalar_lea.vmem %s857_s2, %s645_s9 }
  0x11   : > { %653 = vmatprep.subr.bf16.mxu0 %v700_v6  ;;  %v712_v11 = vld [vmem:[%s239_s14 + $0x4] ss:$8 sps:$4 sm:$0xff]   ;;  %v710_v17 = vld [vmem:[%s239_s14] ss:$8 sps:$4 sm:$0xff]   ;;  %s256_s19 = scalar_lea.vmem %s859_s4, %s865_s15 }
  0x12   : > { %436 = vmatprep.mubr.bf16.mxu0 %v712_v11 }
  0x14   : > { %654 = vmatpush3.bf16.msra.mxu0 %v701_v7 }
  0x15   : > { %655 = vmatprep.subr.bf16.mxu0 %v702_v8 }
  0x18   : > { %656 = vmatpush3.bf16.msra.mxu0 %v703_v9 }
  0x19   : > { %657 = vmatprep.subr.bf16.mxu0 %v704_v10 }
  0x1c   : > { %658 = vmatpush3.bf16.msra.mxu0 %v705_v12 }
  0x1d   : > { %659 = vmatprep.subr.bf16.mxu0 %v706_v13 }
  0x20   : > { %660 = vmatpush3.bf16.msra.mxu0 %v707_v14 }
  0x21   : > { %661 = vmatprep.subr.bf16.mxu0 %v708_v15 }
  0x24   : > { %662 = vmatpush3.bf16.msra.mxu0 %v709_v16 }
  0x27   : > { %437 = vmatmul.mubr.bf16.vlgmr.msra.gmra.mrb[0].mxu0 %v710_v17 }
  0xfa   : > { %v663_v19 = vpop.f32.mrb[0].mxu0 }
  0xfb   : > { %v664_v20 = vpop.f32.mrb[1].mxu0 }
  0xfc   : > { %v665_v21 = vadd.f32 %v664_v20, %v663_v19  ;;  %v666_v22 = vpop.f32.mrb[2].mxu0 }
  0xfd   : > { %v667_v23 = vpop.f32.mrb[3].mxu0 }
  0xfe   : > { %445 = vst [vmem:[%s249_s10] sm:$0xff] %v665_v21  ;;  %v668_v24 = vadd.f32 %v667_v23, %v666_v22  ;;  %v458_v25 = vmul.f32 %v665_v21, %v665_v21 }
 0x100   : > { %446 = vst [vmem:[%s249_s10 + $0x8] sm:$0xff] %v668_v24  ;;  %v448_v26 = vadd.f32 %v668_v24, %v665_v21  ;;  %v459_v27 = vmul.f32 %v668_v24, %v668_v24 }
 0x102   : > { %v449_v28 = vrot.slane %v448_v26, 4  ;;  %v460_v29 = vadd.f32 %v459_v27, %v458_v25 }
 0x104   : > { %v450_v30 = vadd.f32 %v449_v28, %v448_v26  ;;  %v461_v31 = vrot.slane %v460_v29, 4 }
 0x106   : > { %v451_v32 = vrot.slane %v450_v30, 2  ;;  %v462_v33 = vadd.f32 %v461_v31, %v460_v29 }
 0x108   : > { %v452_v34 = vadd.f32 %v451_v32, %v450_v30  ;;  %v463_v35 = vrot.slane %v462_v33, 2 }
 0x10a   : > { %v453_v36 = vrot.slane %v452_v34, 1  ;;  %v464_v37 = vadd.f32 %v463_v35, %v462_v33 }
 0x10c   : > { %v454_v39 = vadd.f32 %v453_v36, %v452_v34  ;;  %v465_v40 = vrot.slane %v464_v37, 1 }
 0x10e   : > { %v455_v42 = vadd.f32 %v454_v39, %v447_v38  ;;  %v466_v43 = vadd.f32 %v465_v40, %v464_v37 }
 0x110   : > { %456 = vst [vmem:[#allocation2] sm:$0x1] %v455_v42  ;;  %v467_v44 = vadd.f32 %v466_v43, %v457_v41 }
 0x112   : > { %468 = vst [vmem:[#allocation3] sm:$0x1] %v467_v44 }
 0x117   : > { %v472_v45 = vld [vmem:[#allocation2] sm:$0x1] }
 0x118   : > { %473 = vst [vmem:[%s253_s12] sm:$0x1] %v472_v45 }
 0x119   : > { %v474_v46 = vld [vmem:[#allocation3] sm:$0x1] }
 0x11a   : > { %475 = vst [vmem:[%s256_s19] sm:$0x1] %v474_v46 }
 0x11b PF: > { %s15_s17 = sadd.s32 1, %s735_s17   ;;  %s860_s15 = smov %s731_s16 }
 0x11c   : > { %p12_p5 = scmp.ge.s32.totalorder %s15_s17, 4   ;;  %s861_s16 = smov %s863_s18 }
 0x11e   :  { %14 = sbr.rel (!%p12_p5) target bundleno = 2 (0x2), region = 90 }

// kernel: discriminator_forward.12
= control target key start
LH: loop header
LB: loop body
LE: loop exit
PB: predicated region body
PF: predicated region fallthrough
CT: control target
= control target key end

     0   :  { %s530_s18 = smov 0   ;;  %s532_s19 = smov 0   ;;  %s580_s0 = inlined_call_operand.vmem [shape: f32[2,16,128], index: 0, kind: input, shape index: {}]   ;;  %s581_s1 = inlined_call_operand.vmem [shape: f32[2,1,128], index: 1, kind: input, shape index: {}]   ;;  %s582_s2 = inlined_call_operand.vmem [shape: f32[2,1,128], index: 2, kind: input, shape index: {}]   ;;  %s583_s3 = inlined_call_operand.vmem [shape: f32[1,128], index: 3, kind: input, shape index: {}]   ;;  %s584_s4 = inlined_call_operand.vmem [shape: f32[1,128], index: 4, kind: input, shape index: {}]   ;;  %s585_s5 = inlined_call_operand.vmem [shape: f32[2,16,128], index: 5, kind: output, shape index: {}]  }
   0x1   :  { %s534_s20 = smov 0  }
   0x2 LB: > { %s27_s21 = sadd.s32 1, %s494_s19  ;;  %p441_p0 = scmp.ge.s32.totalorder %s498_s20, 1  ;;  %s498_s20 = sphi %s534_s20, %s15_s20   ;;  %s494_s19 = sphi %s532_s19, %s587_s19   ;;  %s490_s18 = sphi %s530_s18, %s586_s18  }
   0x3   : > { %p29_p1 = scmp.ge.s32.totalorder %s27_s21, 2  ;;  %p224_p2 = scmp.lt.s32.totalorder %s498_s20, 3 }
   0x5   : > { %s589_s21 = smov (%p29_p1, %s27_s21), 0  ;;  %p225_p3 = pnand %p441_p0, %p224_p2 }
   0x6   : > { %p267_p4 = scmp.lt.s32.totalorder (!%p225_p3), %s490_s18, 1  ;;  %v309_v8 = vlaneseq (!%p225_p3)  ;;  %v299_v10 = vld [vmem:[%s583_s3] sm:$0x1] (!%p225_p3) }
   0x7   : > { %228 = sbr.rel (%p225_p3) target bundleno = 52 (0x34), region = 40  ;;  %v303_v14 = vld [vmem:[%s584_s4] sm:$0x1] (!%p225_p3) }
   0x8   : > { %v310_v9 = vshrl.u32 (!%p225_p3), %v309_v8, 7 }
   0xa   : > { %v311_v11 = vsub.s32 (!%p225_p3), 0, %v310_v9 }
   0xe   : > { %s591_s18 = smov (!%p267_p4, %s490_s18), 1 }
   0xf   : > { %s278_s24 = scalar_lea.vmem %s581_s1, %s591_s18  ;;  %s281_s27 = scalar_lea.vmem %s582_s2, %s591_s18 }
  0x10   : > { %v292_v0 = vld [vmem:[%s278_s24] sm:$0x1]  ;;  %s448_s28 = sshll.u32 %s591_s18, 4 }
  0x11   : > { %v293_v1 = vmul.f32 0.0625, %v292_v0  ;;  %v294_v2 = vld [vmem:[%s281_s27] sm:$0x1]  ;;  %s274_s8 = scalar_lea.vmem %s580_s0, %s448_s28  ;;  %s290_s13 = scalar_lea.vmem %s585_s5, %s448_s28 }
  0x12   : > { %v295_v3 = vmul.f32 0.0625, %v294_v2  ;;  %v306_v15 = vld [vmem:[%s274_s8] sm:$0xff]  ;;  %v307_v16 = vld [vmem:[%s274_s8 + $0x8] sm:$0xff] }
  0x13   : > { %v296_v4 = vmul.f32 %v293_v1, %v293_v1 }
  0x15   : > { %v297_v5 = vsub.f32 %v295_v3, %v296_v4 }
  0x17   : > { %v298_v6 = vmax.f32 %v297_v5, 0.0 }
  0x19   : > { %v300_v7 = vadd.f32 1e-05, %v298_v6 }
  0x1b   : > { %474 = vrsqrt.f32 %v300_v7 }
  0x25   : > { %v475_v12 = vpop.eup %474 }
  0x26   : > { %v302_v13 = vmul.f32 %v475_v12, %v299_v10 }
  0x28   : > { %v304_v17 = vmul.f32 %v302_v13, %v293_v1  ;;  %v312_v18 = vrot.slane %v302_v13, %v311_v11 }
  0x2a   : > { %v305_v19 = vsub.f32 %v303_v14, %v304_v17  ;;  %v314_v20 = vmul.f32 %v312_v18, %v306_v15  ;;  %v315_v21 = vmul.f32 %v312_v18, %v307_v16 }
  0x2c   : > { %v320_v22 = vrot.slane %v305_v19, %v311_v11 }
  0x2e   : > { %v322_v23 = vadd.f32 %v320_v22, %v314_v20  ;;  %v323_v24 = vadd.f32 %v320_v22, %v315_v21 }
  0x30   : > { %vm324_vm0 = vcmp.gt.f32.partialorder %v322_v23, 0.0  ;;  %v326_v25 = vmul.f32 0.2, %v322_v23  ;;  %vm325_vm1 = vcmp.gt.f32.partialorder %v323_v24, 0.0  ;;  %v327_v26 = vmul.f32 0.2, %v323_v24 }
  0x32   : > { %v328_v27 = vsel %vm324_vm0, %v322_v23, %v326_v25  ;;  %v329_v28 = vsel %vm325_vm1, %v323_v24, %v327_v26 }
  0x33   : > { %330 = vst [vmem:[%s290_s13] sm:$0xff] %v328_v27  ;;  %331 = vst [vmem:[%s290_s13 + $0x8] sm:$0xff] %v329_v28 }
  0x34 PF: > { %s15_s20 = sadd.s32 1, %s498_s20   ;;  %s586_s18 = smov %s494_s19 }
  0x35   : > { %p12_p5 = scmp.ge.s32.totalorder %s15_s20, 4   ;;  %s587_s19 = smov %s589_s21 }
  0x37   :  { %14 = sbr.rel (!%p12_p5) target bundleno = 2 (0x2), region = 76 }

// kernel: discriminator_forward.14
= control target key start
LH: loop header
LB: loop body
LE: loop exit
PB: predicated region body
PF: predicated region fallthrough
CT: control target
= control target key end

     0   :  { %s530_s18 = smov 0   ;;  %s532_s19 = smov 0   ;;  %s580_s0 = inlined_call_operand.vmem [shape: f32[2,16,128], index: 0, kind: input, shape index: {}]   ;;  %s581_s1 = inlined_call_operand.vmem [shape: f32[2,1,128], index: 1, kind: input, shape index: {}]   ;;  %s582_s2 = inlined_call_operand.vmem [shape: f32[2,1,128], index: 2, kind: input, shape index: {}]   ;;  %s583_s3 = inlined_call_operand.vmem [shape: f32[1,128], index: 3, kind: input, shape index: {}]   ;;  %s584_s4 = inlined_call_operand.vmem [shape: f32[1,128], index: 4, kind: input, shape index: {}]   ;;  %s585_s5 = inlined_call_operand.vmem [shape: f32[2,16,128], index: 5, kind: output, shape index: {}]  }
   0x1   :  { %s534_s20 = smov 0  }
   0x2 LB: > { %s27_s21 = sadd.s32 1, %s494_s19  ;;  %p441_p0 = scmp.ge.s32.totalorder %s498_s20, 1  ;;  %s498_s20 = sphi %s534_s20, %s15_s20   ;;  %s494_s19 = sphi %s532_s19, %s587_s19   ;;  %s490_s18 = sphi %s530_s18, %s586_s18  }
   0x3   : > { %p29_p1 = scmp.ge.s32.totalorder %s27_s21, 2  ;;  %p224_p2 = scmp.lt.s32.totalorder %s498_s20, 3 }
   0x5   : > { %s589_s21 = smov (%p29_p1, %s27_s21), 0  ;;  %p225_p3 = pnand %p441_p0, %p224_p2 }
   0x6   : > { %p267_p4 = scmp.lt.s32.totalorder (!%p225_p3), %s490_s18, 1  ;;  %v309_v8 = vlaneseq (!%p225_p3)  ;;  %v299_v10 = vld [vmem:[%s583_s3] sm:$0x1] (!%p225_p3) }
   0x7   : > { %228 = sbr.rel (%p225_p3) target bundleno = 52 (0x34), region = 40  ;;  %v303_v14 = vld [vmem:[%s584_s4] sm:$0x1] (!%p225_p3) }
   0x8   : > { %v310_v9 = vshrl.u32 (!%p225_p3), %v309_v8, 7 }
   0xa   : > { %v311_v11 = vsub.s32 (!%p225_p3), 0, %v310_v9 }
   0xe   : > { %s591_s18 = smov (!%p267_p4, %s490_s18), 1 }
   0xf   : > { %s278_s24 = scalar_lea.vmem %s581_s1, %s591_s18  ;;  %s281_s27 = scalar_lea.vmem %s582_s2, %s591_s18 }
  0x10   : > { %v292_v0 = vld [vmem:[%s278_s24] sm:$0x1]  ;;  %s448_s28 = sshll.u32 %s591_s18, 4 }
  0x11   : > { %v293_v1 = vmul.f32 0.11111111, %v292_v0  ;;  %v294_v2 = vld [vmem:[%s281_s27] sm:$0x1]  ;;  %s274_s8 = scalar_lea.vmem %s580_s0, %s448_s28  ;;  %s290_s13 = scalar_lea.vmem %s585_s5, %s448_s28 }
  0x12   : > { %v295_v3 = vmul.f32 0.11111111, %v294_v2  ;;  %v306_v15 = vld [vmem:[%s274_s8] sm:$0xff]  ;;  %v307_v16 = vld [vmem:[%s274_s8 + $0x8] sm:$0xff] }
  0x13   : > { %v296_v4 = vmul.f32 %v293_v1, %v293_v1 }
  0x15   : > { %v297_v5 = vsub.f32 %v295_v3, %v296_v4 }
  0x17   : > { %v298_v6 = vmax.f32 %v297_v5, 0.0 }
  0x19   : > { %v300_v7 = vadd.f32 1e-05, %v298_v6 }
  0x1b   : > { %474 = vrsqrt.f32 %v300_v7 }
  0x25   : > { %v475_v12 = vpop.eup %474 }
  0x26   : > { %v302_v13 = vmul.f32 %v475_v12, %v299_v10 }
  0x28   : > { %v304_v17 = vmul.f32 %v302_v13, %v293_v1  ;;  %v312_v18 = vrot.slane %v302_v13, %v311_v11 }
  0x2a   : > { %v305_v19 = vsub.f32 %v303_v14, %v304_v17  ;;  %v314_v20 = vmul.f32 %v312_v18, %v306_v15  ;;  %v315_v21 = vmul.f32 %v312_v18, %v307_v16 }
  0x2c   : > { %v320_v22 = vrot.slane %v305_v19, %v311_v11 }
  0x2e   : > { %v322_v23 = vadd.f32 %v320_v22, %v314_v20  ;;  %v323_v24 = vadd.f32 %v320_v22, %v315_v21 }
  0x30   : > { %vm324_vm0 = vcmp.gt.f32.partialorder %v322_v23, 0.0  ;;  %v326_v25 = vmul.f32 0.2, %v322_v23  ;;  %vm325_vm1 = vcmp.gt.f32.partialorder %v323_v24, 0.0  ;;  %v327_v26 = vmul.f32 0.2, %v323_v24 }
  0x32   : > { %v328_v27 = vsel %vm324_vm0, %v322_v23, %v326_v25  ;;  %v329_v28 = vsel %vm325_vm1, %v323_v24, %v327_v26 }
  0x33   : > { %330 = vst [vmem:[%s290_s13] sm:$0xff] %v328_v27  ;;  %331 = vst [vmem:[%s290_s13 + $0x8] sm:$0xff] %v329_v28 }
  0x34 PF: > { %s15_s20 = sadd.s32 1, %s498_s20   ;;  %s586_s18 = smov %s494_s19 }
  0x35   : > { %p12_p5 = scmp.ge.s32.totalorder %s15_s20, 4   ;;  %s587_s19 = smov %s589_s21 }
  0x37   :  { %14 = sbr.rel (!%p12_p5) target bundleno = 2 (0x2), region = 76 }

// kernel: discriminator_forward.13
= control target key start
LH: loop header
LB: loop body
LE: loop exit
PB: predicated region body
PF: predicated region fallthrough
CT: control target
= control target key end

     0   :  { %s1003_s15 = smov 0   ;;  %s1005_s16 = smov 0   ;;  %s1148_s0 = inlined_call_operand.vmem [shape: bf16[2,16,512], index: 0, kind: input, shape index: {}]   ;;  %s1149_s1 = inlined_call_operand.vmem [shape: bf16[512,128], index: 1, kind: input, shape index: {}]   ;;  %s1150_s2 = inlined_call_operand.vmem [shape: f32[2,16,128], index: 2, kind: output, shape index: {0}]   ;;  %s1151_s3 = inlined_call_operand.vmem [shape: f32[2,1,128], index: 3, kind: output, shape index: {1}]   ;;  %s1152_s4 = inlined_call_operand.vmem [shape: f32[2,1,128], index: 4, kind: output, shape index: {2}]  }
   0x1   :  { %s1007_s17 = smov 0  }
   0x2 LB: > { %s27_s18 = sadd.s32 1, %s971_s16  ;;  %p801_p0 = scmp.ge.s32.totalorder %s975_s17, 1  ;;  %s975_s17 = sphi %s1007_s17, %s15_s17   ;;  %s971_s16 = sphi %s1005_s16, %s1154_s16   ;;  %s967_s15 = sphi %s1003_s15, %s1153_s15  }
   0x3   : > { %p29_p1 = scmp.ge.s32.totalorder %s27_s18, 2  ;;  %p189_p2 = scmp.lt.s32.totalorder %s975_s17, 3 }
   0x5   : > { %s1156_s18 = smov (%p29_p1, %s27_s18), 0  ;;  %p190_p3 = pnand %p801_p0, %p189_p2 }
   0x6   : > { %v915_v0 = vld [vmem:[%s1149_s1 + $0x40] sm:$0xff] (!%p190_p3)   ;;  %v919_v4 = vld [vmem:[%s1149_s1 + $0x48] sm:$0xff] (!%p190_p3)   ;;  %v923_v8 = vld [vmem:[%s1149_s1 + $0x50] sm:$0xff] (!%p190_p3)   ;;  %p231_p4 = scmp.lt.s32.totalorder (!%p190_p3), %s967_s15, 1  ;;  %v977_v36 = vmov (!%p190_p3), 0.0  }
   0x7   : > { %193 = sbr.rel (%p190_p3) target bundleno = 287 (0x11f), region = 28  ;;  %v916_v1 = vld [vmem:[%s1149_s1 + $0xc0] sm:$0xff] (!%p190_p3)   ;;  %846 = vmatprep.subr.bf16.mxu0 (!%p190_p3), %v915_v0  ;;  %v920_v5 = vld [vmem:[%s1149_s1 + $0xc8] sm:$0xff] (!%p190_p3)   ;;  %v924_v9 = vld [vmem:[%s1149_s1 + $0xd0] sm:$0xff] (!%p190_p3)   ;;  %262 = vst [vmem:[#allocation2] sm:$0x1] (!%p190_p3), %v977_v36 }
   0x8   : > { %v917_v2 = vld [vmem:[%s1149_s1] sm:$0xff] (!%p190_p3)   ;;  %868 = vmatprep.subr.bf16.mxu1 (!%p190_p3), %v916_v1  ;;  %v921_v6 = vld [vmem:[%s1149_s1 + $0x8] sm:$0xff] (!%p190_p3)   ;;  %v925_v10 = vld [vmem:[%s1149_s1 + $0x10] sm:$0xff] (!%p190_p3)   ;;  %263 = vst [vmem:[#allocation3] sm:$0x1] (!%p190_p3), %v977_v36 }
   0x9   : > { %v918_v3 = vld [vmem:[%s1149_s1 + $0x80] sm:$0xff] (!%p190_p3)   ;;  %847 = vmatpush3.bf16.msra.mxu0 (!%p190_p3), %v917_v2  ;;  %v922_v7 = vld [vmem:[%s1149_s1 + $0x88] sm:$0xff] (!%p190_p3)   ;;  %v926_v11 = vld [vmem:[%s1149_s1 + $0x90] sm:$0xff] (!%p190_p3)  }
   0xa   : > { %869 = vmatpush3.bf16.msra.mxu1 (!%p190_p3), %v918_v3  ;;  %848 = vmatprep.subr.bf16.mxu0 (!%p190_p3), %v919_v4  ;;  %v927_v12 = vld [vmem:[%s1149_s1 + $0x58] sm:$0xff] (!%p190_p3)   ;;  %v931_v16 = vld [vmem:[%s1149_s1 + $0x60] sm:$0xff] (!%p190_p3)   ;;  %v935_v20 = vld [vmem:[%s1149_s1 + $0x68] sm:$0xff] (!%p190_p3)  }
   0xb   : > { %870 = vmatprep.subr.bf16.mxu1 (!%p190_p3), %v920_v5  ;;  %v928_v13 = vld [vmem:[%s1149_s1 + $0xd8] sm:$0xff] (!%p190_p3)   ;;  %v932_v17 = vld [vmem:[%s1149_s1 + $0xe0] sm:$0xff] (!%p190_p3)   ;;  %v936_v21 = vld [vmem:[%s1149_s1 + $0xe8] sm:$0xff] (!%p190_p3)  }
   0xc   : > { %v929_v14 = vld [vmem:[%s1149_s1 + $0x18] sm:$0xff] (!%p190_p3)   ;;  %v933_v18 = vld [vmem:[%s1149_s1 + $0x20] sm:$0xff] (!%p190_p3)   ;;  %v937_v22 = vld [vmem:[%s1149_s1 + $0x28] sm:$0xff] (!%p190_p3)  }
   0xd   : > { %849 = vmatpush3.bf16.msra.mxu0 (!%p190_p3), %v921_v6  ;;  %v930_v15 = vld [vmem:[%s1149_s1 + $0x98] sm:$0xff] (!%p190_p3)   ;;  %v934_v19 = vld [vmem:[%s1149_s1 + $0xa0] sm:$0xff] (!%p190_p3)   ;;  %v938_v23 = vld [vmem:[%s1149_s1 + $0xa8] sm:$0xff] (!%p190_p3)  }
   0xe   : > { %871 = vmatpush3.bf16.msra.mxu1 %v922_v7  ;;  %850 = vmatprep.subr.bf16.mxu0 %v923_v8  ;;  %s1158_s15 = smov (!%p231_p4, %s967_s15), 1  ;;  %v939_v24 = vld [vmem:[%s1149_s1 + $0x70] sm:$0xff]   ;;  %v943_v28 = vld [vmem:[%s1149_s1 + $0x78] sm:$0xff]   ;;  %v628_v0 = vld [vmem:[#allocation2] sm:$0x1] }
   0xf   : > { %872 = vmatprep.subr.bf16.mxu1 %v924_v9  ;;  %v940_v25 = vld [vmem:[%s1149_s1 + $0xf0] sm:$0xff]   ;;  %s844_s29 = sshll.u32 %s1158_s15, 5  ;;  %v944_v29 = vld [vmem:[%s1149_s1 + $0xf8] sm:$0xff]   ;;  %s845_s21 = sshll.u32 %s1158_s15, 4  ;;  %v638_v3 = vld [vmem:[#allocation3] sm:$0x1] }
  0x10   : > { %v941_v26 = vld [vmem:[%s1149_s1 + $0x30] sm:$0xff]   ;;  %s239_s12 = scalar_lea.vmem %s1148_s0, %s844_s29  ;;  %v945_v30 = vld [vmem:[%s1149_s1 + $0x38] sm:$0xff]   ;;  %s249_s24 = scalar_lea.vmem %s1150_s2, %s845_s21 }
  0x11   : > { %851 = vmatpush3.bf16.msra.mxu0 %v925_v10  ;;  %v942_v27 = vld [vmem:[%s1149_s1 + $0xb0] sm:$0xff]   ;;  %v946_v31 = vld [vmem:[%s1149_s1 + $0xb8] sm:$0xff]   ;;  %s253_s27 = scalar_lea.vmem %s1151_s3, %s1158_s15  ;;  %s256_s30 = scalar_lea.vmem %s1152_s4, %s1158_s15 }
  0x12   : > { %873 = vmatpush3.bf16.msra.mxu1 %v926_v11  ;;  %852 = vmatprep.subr.bf16.mxu0 %v927_v12  ;;  %v947_v32 = vld [vmem:[%s239_s12] ss:$16 sps:$4 sm:$0xff]   ;;  %v949_v33 = vld [vmem:[%s239_s12 + $0x4] ss:$16 sps:$4 sm:$0xff]   ;;  %v950_v34 = vld [vmem:[%s239_s12 + $0x8] ss:$16 sps:$4 sm:$0xff]  }
  0x13   : > { %874 = vmatprep.subr.bf16.mxu1 %v928_v13  ;;  %v952_v35 = vld [vmem:[%s239_s12 + $0xc] ss:$16 sps:$4 sm:$0xff]   ;;  %576 = vmatprep.mubr.bf16.mxu0 %v949_v33 }
  0x14   : > { %617 = vmatprep.mubr.bf16.mxu1 %v952_v35 }
  0x15   : > { %853 = vmatpush3.bf16.msra.mxu0 %v929_v14 }
  0x16   : > { %875 = vmatpush3.bf16.msra.mxu1 %v930_v15  ;;  %854 = vmatprep.subr.bf16.mxu0 %v931_v16 }
  0x17   : > { %876 = vmatprep.subr.bf16.mxu1 %v932_v17 }
  0x19   : > { %855 = vmatpush3.bf16.msra.mxu0 %v933_v18 }
  0x1a   : > { %877 = vmatpush3.bf16.msra.mxu1 %v934_v19  ;;  %856 = vmatprep.subr.bf16.mxu0 %v935_v20 }
  0x1b   : > { %878 = vmatprep.subr.bf16.mxu1 %v936_v21 }
  0x1d   : > { %857 = vmatpush3.bf16.msra.mxu0 %v937_v22 }
  0x1e   : > { %879 = vmatpush3.bf16.msra.mxu1 %v938_v23  ;;  %858 = vmatprep.subr.bf16.mxu0 %v939_v24 }
  0x1f   : > { %880 = vmatprep.subr.bf16.mxu1 %v940_v25 }
  0x21   : > { %859 = vmatpush3.bf16.msra.mxu0 %v941_v26 }
  0x22   : > { %881 = vmatpush3.bf16.msra.mxu1 %v942_v27  ;;  %860 = vmatprep.subr.bf16.mxu0 %v943_v28 }
  0x23   : > { %882 = vmatprep.subr.bf16.mxu1 %v944_v29 }
  0x25   : > { %861 = vmatpush3.bf16.msra.mxu0 %v945_v30 }
  0x26   : > { %883 = vmatpush3.bf16.msra.mxu1 %v946_v31 }
  0x28   : > { %577 = vmatmul.mubr.bf16.vlgmr.msra.gmra.mrb[0].mxu0 %v947_v32 }
  0x29   : > { %618 = vmatmul.mubr.bf16.vlgmr.msra.gmra.mrb[0].mxu1 %v950_v34 }
  0xfb   : > { %v862_v37 = vpop.f32.mrb[0].mxu0 }
  0xfc   : > { %v884_v38 = vpop.f32.mrb[0].mxu1  ;;  %v863_v39 = vpop.f32.mrb[1].mxu0 }
  0xfd   : > { %v864_v40 = vadd.f32 %v863_v39, %v862_v37  ;;  %v885_v41 = vpop.f32.mrb[1].mxu1  ;;  %v865_v42 = vpop.f32.mrb[2].mxu0 }
  0xfe   : > { %v886_v43 = vadd.f32 %v885_v41, %v884_v38  ;;  %v887_v44 = vpop.f32.mrb[2].mxu1  ;;  %v866_v45 = vpop.f32.mrb[3].mxu0 }
  0xff   : > { %v867_v46 = vadd.f32 %v866_v45, %v865_v42  ;;  %v888_v47 = vpop.f32.mrb[3].mxu1 }
 0x100   : > { %v620_v48 = vadd.f32 %v886_v43, %v864_v40  ;;  %v889_v49 = vadd.f32 %v888_v47, %v887_v44 }
 0x102   : > { %626 = vst [vmem:[%s249_s24] sm:$0xff] %v620_v48  ;;  %v623_v50 = vadd.f32 %v889_v49, %v867_v46  ;;  %v639_v51 = vmul.f32 %v620_v48, %v620_v48 }
 0x104   : > { %627 = vst [vmem:[%s249_s24 + $0x8] sm:$0xff] %v623_v50  ;;  %v629_v52 = vadd.f32 %v623_v50, %v620_v48  ;;  %v640_v53 = vmul.f32 %v623_v50, %v623_v50 }
 0x106   : > { %v630_v54 = vrot.slane %v629_v52, 4  ;;  %v641_v55 = vadd.f32 %v640_v53, %v639_v51 }
 0x108   : > { %v631_v56 = vadd.f32 %v630_v54, %v629_v52  ;;  %v642_v57 = vrot.slane %v641_v55, 4 }
 0x10a   : > { %v632_v58 = vrot.slane %v631_v56, 2  ;;  %v643_v59 = vadd.f32 %v642_v57, %v641_v55 }
 0x10c   : > { %v633_v60 = vadd.f32 %v632_v58, %v631_v56  ;;  %v644_v61 = vrot.slane %v643_v59, 2 }
 0x10e   : > { %v634_v62 = vrot.slane %v633_v60, 1  ;;  %v645_v63 = vadd.f32 %v644_v61, %v643_v59 }
 0x110   : > { %v635_v1 = vadd.f32 %v634_v62, %v633_v60  ;;  %v646_v2 = vrot.slane %v645_v63, 1 }
 0x112   : > { %v636_v4 = vadd.f32 %v635_v1, %v628_v0  ;;  %v647_v5 = vadd.f32 %v646_v2, %v645_v63 }
 0x114   : > { %637 = vst [vmem:[#allocation2] sm:$0x1] %v636_v4  ;;  %v648_v6 = vadd.f32 %v647_v5, %v638_v3 }
 0x116   : > { %649 = vst [vmem:[#allocation3] sm:$0x1] %v648_v6 }
 0x11b   : > { %v653_v7 = vld [vmem:[#allocation2] sm:$0x1] }
 0x11c   : > { %654 = vst [vmem:[%s253_s27] sm:$0x1] %v653_v7 }
 0x11d   : > { %v655_v8 = vld [vmem:[#allocation3] sm:$0x1] }
 0x11e   : > { %656 = vst [vmem:[%s256_s30] sm:$0x1] %v655_v8 }
 0x11f PF: > { %s15_s17 = sadd.s32 1, %s975_s17   ;;  %s1153_s15 = smov %s971_s16 }
 0x120   : > { %p12_p5 = scmp.ge.s32.totalorder %s15_s17, 4   ;;  %s1154_s16 = smov %s1156_s18 }
 0x122   :  { %14 = sbr.rel (!%p12_p5) target bundleno = 2 (0x2), region = 90 }

// kernel: discriminator_forward.15
= control target key start
LH: loop header
LB: loop body
LE: loop exit
PB: predicated region body
PF: predicated region fallthrough
CT: control target
= control target key end

     0   :  { %s1194_s1 = inlined_call_operand.vmem [shape: bf16[1024,128], index: 1, kind: input, shape index: {}]   ;;  %s1195_s0 = inlined_call_operand.vmem [shape: bf16[8,1024], index: 0, kind: input, shape index: {}]   ;;  %s1196_s2 = inlined_call_operand.vmem [shape: f32[1,128], index: 2, kind: input, shape index: {}]   ;;  %s1197_s3 = inlined_call_operand.vmem [shape: f32[8,128], index: 3, kind: output, shape index: {}]  }
   0x1   :  { %v892_v0 = vld [vmem:[%s1194_s1 + $0x40] sm:$0xff]   ;;  %v896_v4 = vld [vmem:[%s1194_s1 + $0x48] sm:$0xff]   ;;  %v900_v8 = vld [vmem:[%s1194_s1 + $0x50] sm:$0xff]  }
   0x2   :  { %v893_v1 = vld [vmem:[%s1194_s1 + $0xc0] sm:$0xff]   ;;  %804 = vmatprep.subr.bf16.mxu0 %v892_v0  ;;  %v897_v5 = vld [vmem:[%s1194_s1 + $0xc8] sm:$0xff]   ;;  %v901_v9 = vld [vmem:[%s1194_s1 + $0xd0] sm:$0xff]  }
   0x3   :  { %v894_v2 = vld [vmem:[%s1194_s1] sm:$0xff]   ;;  %826 = vmatprep.subr.bf16.mxu1 %v893_v1  ;;  %v898_v6 = vld [vmem:[%s1194_s1 + $0x8] sm:$0xff]   ;;  %v902_v10 = vld [vmem:[%s1194_s1 + $0x10] sm:$0xff]  }
   0x4   :  { %v895_v3 = vld [vmem:[%s1194_s1 + $0x80] sm:$0xff]   ;;  %805 = vmatpush3.bf16.msra.mxu0 %v894_v2  ;;  %v899_v7 = vld [vmem:[%s1194_s1 + $0x88] sm:$0xff]   ;;  %v903_v11 = vld [vmem:[%s1194_s1 + $0x90] sm:$0xff]  }
   0x5   :  { %827 = vmatpush3.bf16.msra.mxu1 %v895_v3  ;;  %806 = vmatprep.subr.bf16.mxu0 %v896_v4  ;;  %v904_v12 = vld [vmem:[%s1194_s1 + $0x58] sm:$0xff]   ;;  %v908_v16 = vld [vmem:[%s1194_s1 + $0x60] sm:$0xff]   ;;  %v912_v20 = vld [vmem:[%s1194_s1 + $0x68] sm:$0xff]  }
   0x6   :  { %828 = vmatprep.subr.bf16.mxu1 %v897_v5  ;;  %v905_v13 = vld [vmem:[%s1194_s1 + $0xd8] sm:$0xff]   ;;  %v909_v17 = vld [vmem:[%s1194_s1 + $0xe0] sm:$0xff]   ;;  %v913_v21 = vld [vmem:[%s1194_s1 + $0xe8] sm:$0xff]  }
   0x7   :  { %v906_v14 = vld [vmem:[%s1194_s1 + $0x18] sm:$0xff]   ;;  %v910_v18 = vld [vmem:[%s1194_s1 + $0x20] sm:$0xff]   ;;  %v914_v22 = vld [vmem:[%s1194_s1 + $0x28] sm:$0xff]  }
   0x8   :  { %807 = vmatpush3.bf16.msra.mxu0 %v898_v6  ;;  %v907_v15 = vld [vmem:[%s1194_s1 + $0x98] sm:$0xff]   ;;  %v911_v19 = vld [vmem:[%s1194_s1 + $0xa0] sm:$0xff]   ;;  %v915_v23 = vld [vmem:[%s1194_s1 + $0xa8] sm:$0xff]  }
   0x9   :  { %829 = vmatpush3.bf16.msra.mxu1 %v899_v7  ;;  %808 = vmatprep.subr.bf16.mxu0 %v900_v8  ;;  %v916_v24 = vld [vmem:[%s1194_s1 + $0x70] sm:$0xff]   ;;  %v920_v28 = vld [vmem:[%s1194_s1 + $0x78] sm:$0xff]   ;;  %v15_v32 = vld [vmem:[%s1195_s0] sm:$0xff] }
   0xa   :  { %830 = vmatprep.subr.bf16.mxu1 %v901_v9  ;;  %v917_v25 = vld [vmem:[%s1194_s1 + $0xf0] sm:$0xff]   ;;  %v921_v29 = vld [vmem:[%s1194_s1 + $0xf8] sm:$0xff]   ;;  %v16_v33 = vld [vmem:[%s1195_s0 + $0x8] sm:$0xff]  ;;  %v732_v34 = vcombine.low %v15_v32, %v15_v32  ;;  %v733_v35 = vcombine.high %v15_v32, %v15_v32 }
   0xb   :  { %v918_v26 = vld [vmem:[%s1194_s1 + $0x30] sm:$0xff]   ;;  %v922_v30 = vld [vmem:[%s1194_s1 + $0x38] sm:$0xff]   ;;  %v734_v36 = vcombine.low %v16_v33, %v16_v33  ;;  %v735_v37 = vcombine.high %v16_v33, %v16_v33  ;;  %v928_v38 = vld [vmem:[%s1194_s1 + $0x140] sm:$0xff]  }
   0xc   :  { %809 = vmatpush3.bf16.msra.mxu0 %v902_v10  ;;  %v919_v27 = vld [vmem:[%s1194_s1 + $0xb0] sm:$0xff]   ;;  %v923_v31 = vld [vmem:[%s1194_s1 + $0xb8] sm:$0xff]   ;;  %v929_v39 = vld [vmem:[%s1194_s1 + $0x1c0] sm:$0xff]   ;;  %598 = vmatprep.mubr.bf16.mxu0 %v733_v35 }
   0xd   :  { %831 = vmatpush3.bf16.msra.mxu1 %v903_v11  ;;  %810 = vmatprep.subr.bf16.mxu0 %v904_v12  ;;  %v930_v40 = vld [vmem:[%s1194_s1 + $0x100] sm:$0xff]   ;;  %v932_v42 = vld [vmem:[%s1194_s1 + $0x148] sm:$0xff]   ;;  %v936_v46 = vld [vmem:[%s1194_s1 + $0x150] sm:$0xff]  }
   0xe   :  { %832 = vmatprep.subr.bf16.mxu1 %v905_v13  ;;  %638 = vmatprep.mubr.bf16.mxu1 %v735_v37  ;;  %v931_v41 = vld [vmem:[%s1194_s1 + $0x180] sm:$0xff]   ;;  %v933_v43 = vld [vmem:[%s1194_s1 + $0x1c8] sm:$0xff]   ;;  %v937_v47 = vld [vmem:[%s1194_s1 + $0x1d0] sm:$0xff]  }
   0xf   :  { %v934_v44 = vld [vmem:[%s1194_s1 + $0x108] sm:$0xff]   ;;  %v938_v48 = vld [vmem:[%s1194_s1 + $0x110] sm:$0xff]   ;;  %v940_v50 = vld [vmem:[%s1194_s1 + $0x158] sm:$0xff]  }
  0x10   :  { %811 = vmatpush3.bf16.msra.mxu0 %v906_v14  ;;  %v935_v45 = vld [vmem:[%s1194_s1 + $0x188] sm:$0xff]   ;;  %v939_v49 = vld [vmem:[%s1194_s1 + $0x190] sm:$0xff]   ;;  %v941_v51 = vld [vmem:[%s1194_s1 + $0x1d8] sm:$0xff]  }
  0x11   :  { %833 = vmatpush3.bf16.msra.mxu1 %v907_v15  ;;  %812 = vmatprep.subr.bf16.mxu0 %v908_v16  ;;  %v942_v52 = vld [vmem:[%s1194_s1 + $0x118] sm:$0xff]   ;;  %v944_v54 = vld [vmem:[%s1194_s1 + $0x160] sm:$0xff]   ;;  %v948_v58 = vld [vmem:[%s1194_s1 + $0x168] sm:$0xff]  }
  0x12   :  { %834 = vmatprep.subr.bf16.mxu1 %v909_v17  ;;  %v943_v53 = vld [vmem:[%s1194_s1 + $0x198] sm:$0xff]   ;;  %v945_v55 = vld [vmem:[%s1194_s1 + $0x1e0] sm:$0xff]   ;;  %v949_v59 = vld [vmem:[%s1194_s1 + $0x1e8] sm:$0xff]  }
  0x13   :  { %v946_v56 = vld [vmem:[%s1194_s1 + $0x120] sm:$0xff]   ;;  %v950_v60 = vld [vmem:[%s1194_s1 + $0x128] sm:$0xff]   ;;  %v952_v62 = vld [vmem:[%s1194_s1 + $0x170] sm:$0xff]  }
  0x14   :  { %813 = vmatpush3.bf16.msra.mxu0 %v910_v18  ;;  %v947_v57 = vld [vmem:[%s1194_s1 + $0x1a0] sm:$0xff]   ;;  %v951_v61 = vld [vmem:[%s1194_s1 + $0x1a8] sm:$0xff]   ;;  %v953_v63 = vld [vmem:[%s1194_s1 + $0x1f0] sm:$0xff]  }
  0x15   :  { %835 = vmatpush3.bf16.msra.mxu1 %v911_v19  ;;  %814 = vmatprep.subr.bf16.mxu0 %v912_v20  ;;  %v954_v0 = vld [vmem:[%s1194_s1 + $0x130] sm:$0xff]   ;;  %v956_v2 = vld [vmem:[%s1194_s1 + $0x178] sm:$0xff]   ;;  %v731_v14 = vld [vmem:[%s1196_s2] ss:$0 sm:$0xff] }
  0x16   :  { %836 = vmatprep.subr.bf16.mxu1 %v913_v21  ;;  %v955_v1 = vld [vmem:[%s1194_s1 + $0x1b0] sm:$0xff]   ;;  %v957_v3 = vld [vmem:[%s1194_s1 + $0x1f8] sm:$0xff]  }
  0x17   :  { %v958_v4 = vld [vmem:[%s1194_s1 + $0x138] sm:$0xff]   ;;  %v17_v6 = vld [vmem:[%s1195_s0 + $0x10] sm:$0xff] }
  0x18   :  { %815 = vmatpush3.bf16.msra.mxu0 %v914_v22  ;;  %v959_v5 = vld [vmem:[%s1194_s1 + $0x1b8] sm:$0xff]   ;;  %v736_v7 = vcombine.low %v17_v6, %v17_v6  ;;  %v737_v8 = vcombine.high %v17_v6, %v17_v6 }
  0x19   :  { %837 = vmatpush3.bf16.msra.mxu1 %v915_v23  ;;  %816 = vmatprep.subr.bf16.mxu0 %v916_v24  ;;  %v18_v9 = vld [vmem:[%s1195_s0 + $0x18] sm:$0xff] }
  0x1a   :  { %838 = vmatprep.subr.bf16.mxu1 %v917_v25  ;;  %v738_v10 = vcombine.low %v18_v9, %v18_v9  ;;  %v739_v11 = vcombine.high %v18_v9, %v18_v9 }
  0x1c   :  { %817 = vmatpush3.bf16.msra.mxu0 %v918_v26 }
  0x1d   :  { %839 = vmatpush3.bf16.msra.mxu1 %v919_v27  ;;  %818 = vmatprep.subr.bf16.mxu0 %v920_v28 }
  0x1e   :  { %840 = vmatprep.subr.bf16.mxu1 %v921_v29 }
  0x20   :  { %819 = vmatpush3.bf16.msra.mxu0 %v922_v30 }
  0x21   :  { %841 = vmatpush3.bf16.msra.mxu1 %v923_v31  ;;  %848 = vmatprep.subr.bf16.mxu0 %v928_v38 }
  0x22   :  { %870 = vmatprep.subr.bf16.mxu1 %v929_v39 }
  0x23   :  { %599 = vmatmul.mubr.bf16.vlgmr.msra.gmra.mrb[0].mxu0 %v732_v34 }
  0x24   :  { %639 = vmatmul.mubr.bf16.vlgmr.msra.gmra.mrb[0].mxu1 %v734_v36  ;;  %849 = vmatpush3.bf16.msra.mxu0 %v930_v40 }
  0x25   :  { %871 = vmatpush3.bf16.msra.mxu1 %v931_v41  ;;  %850 = vmatprep.subr.bf16.mxu0 %v932_v42 }
  0x26   :  { %872 = vmatprep.subr.bf16.mxu1 %v933_v43  ;;  %678 = vmatprep.mubr.bf16.mxu0 %v737_v8 }
  0x27   :  { %718 = vmatprep.mubr.bf16.mxu1 %v739_v11 }
  0x28   :  { %851 = vmatpush3.bf16.msra.mxu0 %v934_v44 }
  0x29   :  { %873 = vmatpush3.bf16.msra.mxu1 %v935_v45  ;;  %852 = vmatprep.subr.bf16.mxu0 %v936_v46 }
  0x2a   :  { %874 = vmatprep.subr.bf16.mxu1 %v937_v47 }
  0x2c   :  { %853 = vmatpush3.bf16.msra.mxu0 %v938_v48 }
  0x2d   :  { %875 = vmatpush3.bf16.msra.mxu1 %v939_v49  ;;  %854 = vmatprep.subr.bf16.mxu0 %v940_v50 }
  0x2e   :  { %876 = vmatprep.subr.bf16.mxu1 %v941_v51 }
  0x30   :  { %855 = vmatpush3.bf16.msra.mxu0 %v942_v52 }
  0x31   :  { %877 = vmatpush3.bf16.msra.mxu1 %v943_v53  ;;  %856 = vmatprep.subr.bf16.mxu0 %v944_v54 }
  0x32   :  { %878 = vmatprep.subr.bf16.mxu1 %v945_v55 }
  0x34   :  { %857 = vmatpush3.bf16.msra.mxu0 %v946_v56 }
  0x35   :  { %879 = vmatpush3.bf16.msra.mxu1 %v947_v57  ;;  %858 = vmatprep.subr.bf16.mxu0 %v948_v58 }
  0x36   :  { %880 = vmatprep.subr.bf16.mxu1 %v949_v59 }
  0x38   :  { %859 = vmatpush3.bf16.msra.mxu0 %v950_v60 }
  0x39   :  { %881 = vmatpush3.bf16.msra.mxu1 %v951_v61  ;;  %860 = vmatprep.subr.bf16.mxu0 %v952_v62 }
  0x3a   :  { %882 = vmatprep.subr.bf16.mxu1 %v953_v63 }
  0x3c   :  { %861 = vmatpush3.bf16.msra.mxu0 %v954_v0 }
  0x3d   :  { %883 = vmatpush3.bf16.msra.mxu1 %v955_v1  ;;  %862 = vmatprep.subr.bf16.mxu0 %v956_v2 }
  0x3e   :  { %884 = vmatprep.subr.bf16.mxu1 %v957_v3 }
  0x40   :  { %863 = vmatpush3.bf16.msra.mxu0 %v958_v4 }
  0x41   :  { %885 = vmatpush3.bf16.msra.mxu1 %v959_v5 }
  0x43   :  { %679 = vmatmul.mubr.bf16.vlgmr.msra.gmra.mrb[4].mxu0 %v736_v7 }
  0x44   :  { %719 = vmatmul.mubr.bf16.vlgmr.msra.gmra.mrb[4].mxu1 %v738_v10 }
  0xf6   :  { %v820_v12 = vpop.f32.mrb[0].mxu0 }
  0xf7   :  { %v842_v13 = vpop.f32.mrb[0].mxu1  ;;  %v821_v15 = vpop.f32.mrb[1].mxu0 }
  0xf8   :  { %v843_v16 = vpop.f32.mrb[1].mxu1  ;;  %v822_v17 = vadd.f32 %v821_v15, %v820_v12  ;;  %v823_v19 = vpop.f32.mrb[2].mxu0 }
  0xf9   :  { %v844_v18 = vadd.f32 %v843_v16, %v842_v13  ;;  %v845_v20 = vpop.f32.mrb[2].mxu1  ;;  %v824_v21 = vpop.f32.mrb[3].mxu0 }
  0xfa   :  { %v846_v22 = vpop.f32.mrb[3].mxu1  ;;  %v601_v23 = vadd.f32 %v822_v17, %v731_v14 }
  0xfc   :  { %v641_v24 = vadd.f32 %v844_v18, %v601_v23 }
 0x116   :  { %v864_v25 = vpop.f32.mrb[4].mxu0 }
 0x117   :  { %v886_v26 = vpop.f32.mrb[4].mxu1  ;;  %v865_v27 = vpop.f32.mrb[5].mxu0 }
 0x118   :  { %v887_v28 = vpop.f32.mrb[5].mxu1  ;;  %v866_v29 = vadd.f32 %v865_v27, %v864_v25  ;;  %v867_v31 = vpop.f32.mrb[6].mxu0 }
 0x119   :  { %v888_v30 = vadd.f32 %v887_v28, %v886_v26  ;;  %v889_v32 = vpop.f32.mrb[6].mxu1  ;;  %v868_v33 = vpop.f32.mrb[7].mxu0 }
 0x11a   :  { %v890_v34 = vpop.f32.mrb[7].mxu1  ;;  %v681_v35 = vadd.f32 %v866_v29, %v641_v24 }
 0x11c   :  { %v721_v36 = vadd.f32 %v888_v30, %v681_v35 }
 0x11e   :  { %726 = vst [vmem:[%s1197_s3] sm:$0xff] %v721_v36 }

</bundles_post_ra>
